<compile_context>
chip_gen: v5e
topology: v5e:2x2
jax: 0.10.0
libtpu: 0.0.40
codegen_flags: <defaults>
</compile_context>

<pallas_src>
import numpy as np

import jax
import jax.numpy as jnp
from jax.experimental import pallas as pl
from jax.experimental.pallas import tpu as pltpu

INPUT_DIM = 5
HIDDEN = 64
BPAD = 8  # sublane-padded per-timestep batch


def _make_birnn_kernel(T, H):
    H2 = 2 * H   # fused state width   (128)
    H6 = 6 * H   # sigmoid slab width  (384)

    def kernel(x_ref,     # (T*BPAD, 2D) f32  interleaved [x_t | x_{T-1-t}], batch zero-padded
               wx_ref,    # (2D, 8H)  f32     fused (transfer o input-to-gate), gate-reordered
               bx_ref,    # (1, 8H)   f32     fused gate bias, gate-reordered
               whh_ref,   # (2H, 8H)  bf16    block-diagonal recurrent weight, gate-reordered
               wfc_ref,   # (1, 2H)   f32     output linear weight (matches [hf | hb] layout)
               bfc_ref,   # (1, 1)    f32
               y_ref):    # (BPAD, 1) f32
        # Prologue: a single matmul yields the input contribution to every gate of
        # every timestep for both directions (time reversal is baked into x layout).
        gx = jnp.dot(x_ref[...], wx_ref[...],
                     preferred_element_type=jnp.float32) + bx_ref[...]   # (T*BPAD, 8H)

        whh = whh_ref[...]   # bf16, resident across the recurrence

        h = jnp.zeros((BPAD, H2), jnp.float32)   # [hf | hb]
        c = jnp.zeros((BPAD, H2), jnp.float32)   # [cf | cb]

        # T is a small static constant -> unrolled; one fused (fwd+bwd) cell per step.
        for t in range(T):
            g = gx[t * BPAD:(t + 1) * BPAD, :] + jnp.dot(
                h.astype(jnp.bfloat16), whh, preferred_element_type=jnp.float32)
            # gate layout: [i_f i_b | f_f f_b | o_f o_b | g_f g_b], each slab H wide
            sg = jax.nn.sigmoid(g[:, :H6])   # 3 full 128-lane slabs (i, f, o)
            tg = jnp.tanh(g[:, H6:])         # 1 full 128-lane slab  (g)
            i_g = sg[:, 0:H2]
            f_g = sg[:, H2:2 * H2]
            o_g = sg[:, 2 * H2:3 * H2]
            c = f_g * c + i_g * tg
            h = o_g * jnp.tanh(c)

        # fc: (B, 2H) @ (2H, 1) done as VPU multiply + lane reduction (no MXU epilogue,
        # no concat — state is already laid out as [hf | hb]).
        y_ref[...] = jnp.sum(h * wfc_ref[...], axis=-1, keepdims=True) + bfc_ref[...]

    return kernel


def _prepare_args(dnn_seq, params):
    """Layout plumbing / weight fusion done once in the wrapper (outside the kernel)."""
    B, T, D = dnn_seq.shape
    H = HIDDEN
    H4, H8 = 4 * H, 8 * H

    # Interleaved, sublane-padded input: row group t = [x_t | x_{T-1-t}], padded to 8 rows.
    x_tm = jnp.transpose(dnn_seq, (1, 0, 2)).astype(jnp.float32)     # (T, B, D)
    x_pad = jnp.zeros((T, BPAD, D), jnp.float32).at[:, :B, :].set(x_tm)
    x_int = jnp.concatenate([x_pad, x_pad[::-1]], axis=-1)           # (T, BPAD, 2D)
    x_int = x_int.reshape(T * BPAD, 2 * D)

    # Fold transfer Linear into the input-to-gate weights:
    #   gx = (x @ Wt.T + bt) @ Wih.T + bih + bhh = x @ (Wt.T @ Wih.T) + (bt @ Wih.T + bih + bhh)
    wt_t = params["wt"].T                                            # (D, H)
    wf_x = wt_t @ params["wih_f"].T                                  # (D, 4H)
    wb_x = wt_t @ params["wih_b"].T
    bf_x = params["bt"] @ params["wih_f"].T + params["bih_f"] + params["bhh_f"]
    bb_x = params["bt"] @ params["wih_b"].T + params["bih_b"] + params["bhh_b"]

    # Gate-column permutation: [i f g o] x 2 dirs -> [i_f i_b | f_f f_b | o_f o_b | g_f g_b]
    def sl(a, b):
        return np.arange(a * H, b * H)
    perm = np.concatenate([sl(0, 1), sl(4, 5),    # i
                           sl(1, 2), sl(5, 6),    # f
                           sl(3, 4), sl(7, 8),    # o
                           sl(2, 3), sl(6, 7)])   # g (tanh)

    w_big = jnp.zeros((2 * D, H8), jnp.float32)
    w_big = w_big.at[:D, :H4].set(wf_x).at[D:, H4:].set(wb_x)        # block "diagonal"
    b_big = jnp.concatenate([bf_x, bb_x])
    whh_big = jnp.zeros((2 * H, H8), jnp.float32)
    whh_big = whh_big.at[:H, :H4].set(params["whh_f"].T).at[H:, H4:].set(params["whh_b"].T)

    wx = w_big[:, perm]
    bx = b_big[perm].reshape(1, H8)
    whh = whh_big[:, perm].astype(jnp.bfloat16)   # bf16 MXU operand, f32 accumulation

    wfc = params["wfc"].reshape(1, 2 * H)          # matches [hf | hb] state layout
    bfc = params["bfc"].reshape(1, 1)
    return x_int, wx, bx, whh, wfc, bfc


@jax.jit
def birnn_forward(dnn_seq, params):
    B, T, _ = dnn_seq.shape
    args = _prepare_args(dnn_seq, params)
    vmem = pl.BlockSpec(memory_space=pltpu.MemorySpace.VMEM)
    y = pl.pallas_call(
        _make_birnn_kernel(T, HIDDEN),
        out_shape=jax.ShapeDtypeStruct((BPAD, 1), jnp.float32),
        in_specs=[vmem] * len(args),
        out_specs=vmem,
    )(*args)
    return y[:B]   # drop sublane padding rows


def init_params(key):
    H, D = HIDDEN, INPUT_DIM
    ks = jax.random.split(key, 12)

    def u(k, shape, fan_in):
        bound = 1.0 / np.sqrt(fan_in)
        return jax.random.uniform(k, shape, jnp.float32, -bound, bound)

    return {
        "wt":    u(ks[0], (H, D), D),
        "bt":    u(ks[1], (H,), D),
        "wih_f": u(ks[2], (4 * H, H), H),
        "whh_f": u(ks[3], (4 * H, H), H),
        "bih_f": u(ks[4], (4 * H,), H),
        "bhh_f": u(ks[5], (4 * H,), H),
        "wih_b": u(ks[6], (4 * H, H), H),
        "whh_b": u(ks[7], (4 * H, H), H),
        "bih_b": u(ks[8], (4 * H,), H),
        "bhh_b": u(ks[9], (4 * H,), H),
        "wfc":   u(ks[10], (1, 2 * H), 2 * H),
        "bfc":   u(ks[11], (1,), 2 * H),
    }


def birnn_ref(dnn_seq, params):
    """Pure-JAX reference matching PyTorch LSTM semantics."""
    H = HIDDEN
    h_lin = dnn_seq @ params["wt"].T + params["bt"]   # (B, T, H)

    def run_dir(wih, whh, bih, bhh, xs):
        Bn = xs.shape[0]

        def step(carry, xt):
            h, c = carry
            g = xt @ wih.T + bih + h @ whh.T + bhh
            i = jax.nn.sigmoid(g[:, :H])
            f = jax.nn.sigmoid(g[:, H:2 * H])
            gg = jnp.tanh(g[:, 2 * H:3 * H])
            o = jax.nn.sigmoid(g[:, 3 * H:])
            c = f * c + i * gg
            h = o * jnp.tanh(c)
            return (h, c), None

        init = (jnp.zeros((Bn, H), jnp.float32), jnp.zeros((Bn, H), jnp.float32))
        (h, _), _ = jax.lax.scan(step, init, jnp.swapaxes(xs, 0, 1))
        return h

    hf = run_dir(params["wih_f"], params["whh_f"], params["bih_f"],
                 params["bhh_f"], h_lin)
    hb = run_dir(params["wih_b"], params["whh_b"], params["bih_b"],
                 params["bhh_b"], h_lin[:, ::-1, :])
    hn = jnp.concatenate([hf, hb], axis=1)
    return hn @ params["wfc"].T + params["bfc"]


if __name__ == "__main__":
    # TODO(synk): predict_delay() in __init__ is a host-side wall-clock benchmark
    # side effect, not part of the forward math; it is intentionally omitted.
    key = jax.random.PRNGKey(0)
    kx, kp = jax.random.split(key)

    B, T = 2, 8
    dnn_seq = jax.random.normal(kx, (B, T, INPUT_DIM), jnp.float32)
    params = init_params(kp)

    y = birnn_forward(dnn_seq, params)
    y = jax.block_until_ready(y)
    assert y.shape == (B, 1)

    y_ref = birnn_ref(dnn_seq, params)
    # bf16 recurrent-matmul operands (f32 accumulate) introduce only small rounding
    # differences vs the pure-f32 reference.
    np.testing.assert_allclose(np.asarray(y), np.asarray(y_ref),
                               rtol=2e-2, atol=5e-3)
    print("KERNEL_OK")
</pallas_src>

<mosaic_0001>
module attributes {stable_mosaic.version = 11 : i64} {
  func.func @kernel(%arg0: memref<64x10xf32, #tpu.memory_space<vmem>>, %arg1: memref<10x512xf32, #tpu.memory_space<vmem>>, %arg2: memref<1x512xf32, #tpu.memory_space<vmem>>, %arg3: memref<128x512xbf16, #tpu.memory_space<vmem>>, %arg4: memref<1x128xf32, #tpu.memory_space<vmem>>, %arg5: memref<1x1xf32, #tpu.memory_space<vmem>>, %arg6: memref<8x1xf32, #tpu.memory_space<vmem>>) attributes {dimension_semantics = [], scalar_prefetch = 0 : i64, scratch_operands = 0 : i64, tpu.core_type = #tpu.core_type<tc>} {
    %c0 = arith.constant 0 : index
    %c0_0 = arith.constant 0 : index
    %0 = vector.load %arg0[%c0, %c0_0] : memref<64x10xf32, #tpu.memory_space<vmem>>, vector<64x10xf32>
    %c0_1 = arith.constant 0 : index
    %c0_2 = arith.constant 0 : index
    %1 = vector.load %arg1[%c0_1, %c0_2] : memref<10x512xf32, #tpu.memory_space<vmem>>, vector<10x512xf32>
    %cst = arith.constant dense<0.000000e+00> : vector<64x512xf32>
    %2 = tpu.matmul %0, %1, %cst {dimension_numbers = #tpu.dot_dimension_numbers<[1], [0], [0], [1], [0, 0, 1, 1], [], []>} : vector<64x10xf32>, vector<10x512xf32>, vector<64x512xf32> -> vector<64x512xf32>
    %c0_3 = arith.constant 0 : index
    %c0_4 = arith.constant 0 : index
    %3 = vector.load %arg2[%c0_3, %c0_4] : memref<1x512xf32, #tpu.memory_space<vmem>>, vector<1x512xf32>
    %4 = vector.broadcast %3 : vector<1x512xf32> to vector<64x512xf32>
    %5 = arith.addf %2, %4 : vector<64x512xf32>
    %c0_5 = arith.constant 0 : index
    %c0_6 = arith.constant 0 : index
    %6 = vector.load %arg3[%c0_5, %c0_6] : memref<128x512xbf16, #tpu.memory_space<vmem>>, vector<128x512xbf16>
    %cst_7 = arith.constant 0.000000e+00 : f32
    %7 = vector.broadcast %cst_7 : f32 to vector<8x128xf32>
    %cst_8 = arith.constant 0.000000e+00 : f32
    %8 = vector.broadcast %cst_8 : f32 to vector<8x128xf32>
    %9 = vector.extract_strided_slice %5 {offsets = [0, 0], sizes = [8, 512], strides = [1, 1]} : vector<64x512xf32> to vector<8x512xf32>
    %10 = arith.truncf %7 : vector<8x128xf32> to vector<8x128xbf16>
    %cst_9 = arith.constant dense<0.000000e+00> : vector<8x512xf32>
    %11 = tpu.matmul %10, %6, %cst_9 {dimension_numbers = #tpu.dot_dimension_numbers<[1], [0], [0], [1], [0, 0, 1, 1], [], []>} : vector<8x128xbf16>, vector<128x512xbf16>, vector<8x512xf32> -> vector<8x512xf32>
    %12 = arith.addf %9, %11 : vector<8x512xf32>
    %13 = vector.extract_strided_slice %12 {offsets = [0, 0], sizes = [8, 384], strides = [1, 1]} : vector<8x512xf32> to vector<8x384xf32>
    %14 = arith.negf %13 : vector<8x384xf32>
    %15 = math.exp %14 : vector<8x384xf32>
    %cst_10 = arith.constant 1.000000e+00 : f32
    %16 = vector.broadcast %cst_10 : f32 to vector<8x384xf32>
    %17 = arith.addf %16, %15 : vector<8x384xf32>
    %18 = arith.divf %16, %17 : vector<8x384xf32>
    %19 = vector.extract_strided_slice %12 {offsets = [0, 384], sizes = [8, 128], strides = [1, 1]} : vector<8x512xf32> to vector<8x128xf32>
    %20 = math.tanh %19 : vector<8x128xf32>
    %21 = vector.extract_strided_slice %18 {offsets = [0, 0], sizes = [8, 128], strides = [1, 1]} : vector<8x384xf32> to vector<8x128xf32>
    %22 = vector.extract_strided_slice %18 {offsets = [0, 128], sizes = [8, 128], strides = [1, 1]} : vector<8x384xf32> to vector<8x128xf32>
    %23 = vector.extract_strided_slice %18 {offsets = [0, 256], sizes = [8, 128], strides = [1, 1]} : vector<8x384xf32> to vector<8x128xf32>
    %24 = arith.mulf %22, %8 : vector<8x128xf32>
    %25 = arith.mulf %21, %20 : vector<8x128xf32>
    %26 = arith.addf %24, %25 : vector<8x128xf32>
    %27 = math.tanh %26 : vector<8x128xf32>
    %28 = arith.mulf %23, %27 : vector<8x128xf32>
    %29 = vector.extract_strided_slice %5 {offsets = [8, 0], sizes = [8, 512], strides = [1, 1]} : vector<64x512xf32> to vector<8x512xf32>
    %30 = arith.truncf %28 : vector<8x128xf32> to vector<8x128xbf16>
    %cst_11 = arith.constant dense<0.000000e+00> : vector<8x512xf32>
    %31 = tpu.matmul %30, %6, %cst_11 {dimension_numbers = #tpu.dot_dimension_numbers<[1], [0], [0], [1], [0, 0, 1, 1], [], []>} : vector<8x128xbf16>, vector<128x512xbf16>, vector<8x512xf32> -> vector<8x512xf32>
    %32 = arith.addf %29, %31 : vector<8x512xf32>
    %33 = vector.extract_strided_slice %32 {offsets = [0, 0], sizes = [8, 384], strides = [1, 1]} : vector<8x512xf32> to vector<8x384xf32>
    %34 = arith.negf %33 : vector<8x384xf32>
    %35 = math.exp %34 : vector<8x384xf32>
    %cst_12 = arith.constant 1.000000e+00 : f32
    %36 = vector.broadcast %cst_12 : f32 to vector<8x384xf32>
    %37 = arith.addf %36, %35 : vector<8x384xf32>
    %38 = arith.divf %36, %37 : vector<8x384xf32>
    %39 = vector.extract_strided_slice %32 {offsets = [0, 384], sizes = [8, 128], strides = [1, 1]} : vector<8x512xf32> to vector<8x128xf32>
    %40 = math.tanh %39 : vector<8x128xf32>
    %41 = vector.extract_strided_slice %38 {offsets = [0, 0], sizes = [8, 128], strides = [1, 1]} : vector<8x384xf32> to vector<8x128xf32>
    %42 = vector.extract_strided_slice %38 {offsets = [0, 128], sizes = [8, 128], strides = [1, 1]} : vector<8x384xf32> to vector<8x128xf32>
    %43 = vector.extract_strided_slice %38 {offsets = [0, 256], sizes = [8, 128], strides = [1, 1]} : vector<8x384xf32> to vector<8x128xf32>
    %44 = arith.mulf %42, %26 : vector<8x128xf32>
    %45 = arith.mulf %41, %40 : vector<8x128xf32>
    %46 = arith.addf %44, %45 : vector<8x128xf32>
    %47 = math.tanh %46 : vector<8x128xf32>
    %48 = arith.mulf %43, %47 : vector<8x128xf32>
    %49 = vector.extract_strided_slice %5 {offsets = [16, 0], sizes = [8, 512], strides = [1, 1]} : vector<64x512xf32> to vector<8x512xf32>
    %50 = arith.truncf %48 : vector<8x128xf32> to vector<8x128xbf16>
    %cst_13 = arith.constant dense<0.000000e+00> : vector<8x512xf32>
    %51 = tpu.matmul %50, %6, %cst_13 {dimension_numbers = #tpu.dot_dimension_numbers<[1], [0], [0], [1], [0, 0, 1, 1], [], []>} : vector<8x128xbf16>, vector<128x512xbf16>, vector<8x512xf32> -> vector<8x512xf32>
    %52 = arith.addf %49, %51 : vector<8x512xf32>
    %53 = vector.extract_strided_slice %52 {offsets = [0, 0], sizes = [8, 384], strides = [1, 1]} : vector<8x512xf32> to vector<8x384xf32>
    %54 = arith.negf %53 : vector<8x384xf32>
    %55 = math.exp %54 : vector<8x384xf32>
    %cst_14 = arith.constant 1.000000e+00 : f32
    %56 = vector.broadcast %cst_14 : f32 to vector<8x384xf32>
    %57 = arith.addf %56, %55 : vector<8x384xf32>
    %58 = arith.divf %56, %57 : vector<8x384xf32>
    %59 = vector.extract_strided_slice %52 {offsets = [0, 384], sizes = [8, 128], strides = [1, 1]} : vector<8x512xf32> to vector<8x128xf32>
    %60 = math.tanh %59 : vector<8x128xf32>
    %61 = vector.extract_strided_slice %58 {offsets = [0, 0], sizes = [8, 128], strides = [1, 1]} : vector<8x384xf32> to vector<8x128xf32>
    %62 = vector.extract_strided_slice %58 {offsets = [0, 128], sizes = [8, 128], strides = [1, 1]} : vector<8x384xf32> to vector<8x128xf32>
    %63 = vector.extract_strided_slice %58 {offsets = [0, 256], sizes = [8, 128], strides = [1, 1]} : vector<8x384xf32> to vector<8x128xf32>
    %64 = arith.mulf %62, %46 : vector<8x128xf32>
    %65 = arith.mulf %61, %60 : vector<8x128xf32>
    %66 = arith.addf %64, %65 : vector<8x128xf32>
    %67 = math.tanh %66 : vector<8x128xf32>
    %68 = arith.mulf %63, %67 : vector<8x128xf32>
    %69 = vector.extract_strided_slice %5 {offsets = [24, 0], sizes = [8, 512], strides = [1, 1]} : vector<64x512xf32> to vector<8x512xf32>
    %70 = arith.truncf %68 : vector<8x128xf32> to vector<8x128xbf16>
    %cst_15 = arith.constant dense<0.000000e+00> : vector<8x512xf32>
    %71 = tpu.matmul %70, %6, %cst_15 {dimension_numbers = #tpu.dot_dimension_numbers<[1], [0], [0], [1], [0, 0, 1, 1], [], []>} : vector<8x128xbf16>, vector<128x512xbf16>, vector<8x512xf32> -> vector<8x512xf32>
    %72 = arith.addf %69, %71 : vector<8x512xf32>
    %73 = vector.extract_strided_slice %72 {offsets = [0, 0], sizes = [8, 384], strides = [1, 1]} : vector<8x512xf32> to vector<8x384xf32>
    %74 = arith.negf %73 : vector<8x384xf32>
    %75 = math.exp %74 : vector<8x384xf32>
    %cst_16 = arith.constant 1.000000e+00 : f32
    %76 = vector.broadcast %cst_16 : f32 to vector<8x384xf32>
    %77 = arith.addf %76, %75 : vector<8x384xf32>
    %78 = arith.divf %76, %77 : vector<8x384xf32>
    %79 = vector.extract_strided_slice %72 {offsets = [0, 384], sizes = [8, 128], strides = [1, 1]} : vector<8x512xf32> to vector<8x128xf32>
    %80 = math.tanh %79 : vector<8x128xf32>
    %81 = vector.extract_strided_slice %78 {offsets = [0, 0], sizes = [8, 128], strides = [1, 1]} : vector<8x384xf32> to vector<8x128xf32>
    %82 = vector.extract_strided_slice %78 {offsets = [0, 128], sizes = [8, 128], strides = [1, 1]} : vector<8x384xf32> to vector<8x128xf32>
    %83 = vector.extract_strided_slice %78 {offsets = [0, 256], sizes = [8, 128], strides = [1, 1]} : vector<8x384xf32> to vector<8x128xf32>
    %84 = arith.mulf %82, %66 : vector<8x128xf32>
    %85 = arith.mulf %81, %80 : vector<8x128xf32>
    %86 = arith.addf %84, %85 : vector<8x128xf32>
    %87 = math.tanh %86 : vector<8x128xf32>
    %88 = arith.mulf %83, %87 : vector<8x128xf32>
    %89 = vector.extract_strided_slice %5 {offsets = [32, 0], sizes = [8, 512], strides = [1, 1]} : vector<64x512xf32> to vector<8x512xf32>
    %90 = arith.truncf %88 : vector<8x128xf32> to vector<8x128xbf16>
    %cst_17 = arith.constant dense<0.000000e+00> : vector<8x512xf32>
    %91 = tpu.matmul %90, %6, %cst_17 {dimension_numbers = #tpu.dot_dimension_numbers<[1], [0], [0], [1], [0, 0, 1, 1], [], []>} : vector<8x128xbf16>, vector<128x512xbf16>, vector<8x512xf32> -> vector<8x512xf32>
    %92 = arith.addf %89, %91 : vector<8x512xf32>
    %93 = vector.extract_strided_slice %92 {offsets = [0, 0], sizes = [8, 384], strides = [1, 1]} : vector<8x512xf32> to vector<8x384xf32>
    %94 = arith.negf %93 : vector<8x384xf32>
    %95 = math.exp %94 : vector<8x384xf32>
    %cst_18 = arith.constant 1.000000e+00 : f32
    %96 = vector.broadcast %cst_18 : f32 to vector<8x384xf32>
    %97 = arith.addf %96, %95 : vector<8x384xf32>
    %98 = arith.divf %96, %97 : vector<8x384xf32>
    %99 = vector.extract_strided_slice %92 {offsets = [0, 384], sizes = [8, 128], strides = [1, 1]} : vector<8x512xf32> to vector<8x128xf32>
    %100 = math.tanh %99 : vector<8x128xf32>
    %101 = vector.extract_strided_slice %98 {offsets = [0, 0], sizes = [8, 128], strides = [1, 1]} : vector<8x384xf32> to vector<8x128xf32>
    %102 = vector.extract_strided_slice %98 {offsets = [0, 128], sizes = [8, 128], strides = [1, 1]} : vector<8x384xf32> to vector<8x128xf32>
    %103 = vector.extract_strided_slice %98 {offsets = [0, 256], sizes = [8, 128], strides = [1, 1]} : vector<8x384xf32> to vector<8x128xf32>
    %104 = arith.mulf %102, %86 : vector<8x128xf32>
    %105 = arith.mulf %101, %100 : vector<8x128xf32>
    %106 = arith.addf %104, %105 : vector<8x128xf32>
    %107 = math.tanh %106 : vector<8x128xf32>
    %108 = arith.mulf %103, %107 : vector<8x128xf32>
    %109 = vector.extract_strided_slice %5 {offsets = [40, 0], sizes = [8, 512], strides = [1, 1]} : vector<64x512xf32> to vector<8x512xf32>
    %110 = arith.truncf %108 : vector<8x128xf32> to vector<8x128xbf16>
    %cst_19 = arith.constant dense<0.000000e+00> : vector<8x512xf32>
    %111 = tpu.matmul %110, %6, %cst_19 {dimension_numbers = #tpu.dot_dimension_numbers<[1], [0], [0], [1], [0, 0, 1, 1], [], []>} : vector<8x128xbf16>, vector<128x512xbf16>, vector<8x512xf32> -> vector<8x512xf32>
    %112 = arith.addf %109, %111 : vector<8x512xf32>
    %113 = vector.extract_strided_slice %112 {offsets = [0, 0], sizes = [8, 384], strides = [1, 1]} : vector<8x512xf32> to vector<8x384xf32>
    %114 = arith.negf %113 : vector<8x384xf32>
    %115 = math.exp %114 : vector<8x384xf32>
    %cst_20 = arith.constant 1.000000e+00 : f32
    %116 = vector.broadcast %cst_20 : f32 to vector<8x384xf32>
    %117 = arith.addf %116, %115 : vector<8x384xf32>
    %118 = arith.divf %116, %117 : vector<8x384xf32>
    %119 = vector.extract_strided_slice %112 {offsets = [0, 384], sizes = [8, 128], strides = [1, 1]} : vector<8x512xf32> to vector<8x128xf32>
    %120 = math.tanh %119 : vector<8x128xf32>
    %121 = vector.extract_strided_slice %118 {offsets = [0, 0], sizes = [8, 128], strides = [1, 1]} : vector<8x384xf32> to vector<8x128xf32>
    %122 = vector.extract_strided_slice %118 {offsets = [0, 128], sizes = [8, 128], strides = [1, 1]} : vector<8x384xf32> to vector<8x128xf32>
    %123 = vector.extract_strided_slice %118 {offsets = [0, 256], sizes = [8, 128], strides = [1, 1]} : vector<8x384xf32> to vector<8x128xf32>
    %124 = arith.mulf %122, %106 : vector<8x128xf32>
    %125 = arith.mulf %121, %120 : vector<8x128xf32>
    %126 = arith.addf %124, %125 : vector<8x128xf32>
    %127 = math.tanh %126 : vector<8x128xf32>
    %128 = arith.mulf %123, %127 : vector<8x128xf32>
    %129 = vector.extract_strided_slice %5 {offsets = [48, 0], sizes = [8, 512], strides = [1, 1]} : vector<64x512xf32> to vector<8x512xf32>
    %130 = arith.truncf %128 : vector<8x128xf32> to vector<8x128xbf16>
    %cst_21 = arith.constant dense<0.000000e+00> : vector<8x512xf32>
    %131 = tpu.matmul %130, %6, %cst_21 {dimension_numbers = #tpu.dot_dimension_numbers<[1], [0], [0], [1], [0, 0, 1, 1], [], []>} : vector<8x128xbf16>, vector<128x512xbf16>, vector<8x512xf32> -> vector<8x512xf32>
    %132 = arith.addf %129, %131 : vector<8x512xf32>
    %133 = vector.extract_strided_slice %132 {offsets = [0, 0], sizes = [8, 384], strides = [1, 1]} : vector<8x512xf32> to vector<8x384xf32>
    %134 = arith.negf %133 : vector<8x384xf32>
    %135 = math.exp %134 : vector<8x384xf32>
    %cst_22 = arith.constant 1.000000e+00 : f32
    %136 = vector.broadcast %cst_22 : f32 to vector<8x384xf32>
    %137 = arith.addf %136, %135 : vector<8x384xf32>
    %138 = arith.divf %136, %137 : vector<8x384xf32>
    %139 = vector.extract_strided_slice %132 {offsets = [0, 384], sizes = [8, 128], strides = [1, 1]} : vector<8x512xf32> to vector<8x128xf32>
    %140 = math.tanh %139 : vector<8x128xf32>
    %141 = vector.extract_strided_slice %138 {offsets = [0, 0], sizes = [8, 128], strides = [1, 1]} : vector<8x384xf32> to vector<8x128xf32>
    %142 = vector.extract_strided_slice %138 {offsets = [0, 128], sizes = [8, 128], strides = [1, 1]} : vector<8x384xf32> to vector<8x128xf32>
    %143 = vector.extract_strided_slice %138 {offsets = [0, 256], sizes = [8, 128], strides = [1, 1]} : vector<8x384xf32> to vector<8x128xf32>
    %144 = arith.mulf %142, %126 : vector<8x128xf32>
    %145 = arith.mulf %141, %140 : vector<8x128xf32>
    %146 = arith.addf %144, %145 : vector<8x128xf32>
    %147 = math.tanh %146 : vector<8x128xf32>
    %148 = arith.mulf %143, %147 : vector<8x128xf32>
    %149 = vector.extract_strided_slice %5 {offsets = [56, 0], sizes = [8, 512], strides = [1, 1]} : vector<64x512xf32> to vector<8x512xf32>
    %150 = arith.truncf %148 : vector<8x128xf32> to vector<8x128xbf16>
    %cst_23 = arith.constant dense<0.000000e+00> : vector<8x512xf32>
    %151 = tpu.matmul %150, %6, %cst_23 {dimension_numbers = #tpu.dot_dimension_numbers<[1], [0], [0], [1], [0, 0, 1, 1], [], []>} : vector<8x128xbf16>, vector<128x512xbf16>, vector<8x512xf32> -> vector<8x512xf32>
    %152 = arith.addf %149, %151 : vector<8x512xf32>
    %153 = vector.extract_strided_slice %152 {offsets = [0, 0], sizes = [8, 384], strides = [1, 1]} : vector<8x512xf32> to vector<8x384xf32>
    %154 = arith.negf %153 : vector<8x384xf32>
    %155 = math.exp %154 : vector<8x384xf32>
    %cst_24 = arith.constant 1.000000e+00 : f32
    %156 = vector.broadcast %cst_24 : f32 to vector<8x384xf32>
    %157 = arith.addf %156, %155 : vector<8x384xf32>
    %158 = arith.divf %156, %157 : vector<8x384xf32>
    %159 = vector.extract_strided_slice %152 {offsets = [0, 384], sizes = [8, 128], strides = [1, 1]} : vector<8x512xf32> to vector<8x128xf32>
    %160 = math.tanh %159 : vector<8x128xf32>
    %161 = vector.extract_strided_slice %158 {offsets = [0, 0], sizes = [8, 128], strides = [1, 1]} : vector<8x384xf32> to vector<8x128xf32>
    %162 = vector.extract_strided_slice %158 {offsets = [0, 128], sizes = [8, 128], strides = [1, 1]} : vector<8x384xf32> to vector<8x128xf32>
    %163 = vector.extract_strided_slice %158 {offsets = [0, 256], sizes = [8, 128], strides = [1, 1]} : vector<8x384xf32> to vector<8x128xf32>
    %164 = arith.mulf %162, %146 : vector<8x128xf32>
    %165 = arith.mulf %161, %160 : vector<8x128xf32>
    %166 = arith.addf %164, %165 : vector<8x128xf32>
    %167 = math.tanh %166 : vector<8x128xf32>
    %168 = arith.mulf %163, %167 : vector<8x128xf32>
    %c0_25 = arith.constant 0 : index
    %c0_26 = arith.constant 0 : index
    %169 = vector.load %arg4[%c0_25, %c0_26] : memref<1x128xf32, #tpu.memory_space<vmem>>, vector<1x128xf32>
    %170 = vector.broadcast %169 : vector<1x128xf32> to vector<8x128xf32>
    %171 = arith.mulf %168, %170 : vector<8x128xf32>
    %cst_27 = arith.constant dense<0.000000e+00> : vector<8xf32>
    %172 = vector.multi_reduction <add>, %171, %cst_27 [1] : vector<8x128xf32> to vector<8xf32>
    %173 = vector.shape_cast %172 : vector<8xf32> to vector<8x1xf32>
    %c0_28 = arith.constant 0 : index
    %c0_29 = arith.constant 0 : index
    %174 = vector.load %arg5[%c0_28, %c0_29] : memref<1x1xf32, #tpu.memory_space<vmem>>, vector<1x1xf32>
    %175 = vector.broadcast %174 : vector<1x1xf32> to vector<8x1xf32>
    %176 = arith.addf %173, %175 : vector<8x1xf32>
    %c0_30 = arith.constant 0 : index
    %c0_31 = arith.constant 0 : index
    %177 = vector.load %arg6[%c0_30, %c0_31] : memref<8x1xf32, #tpu.memory_space<vmem>>, vector<8x1xf32>
    tpu.vector_store %arg6[%c0_30, %c0_31], %176 {strides = array<i32>} : memref<8x1xf32, #tpu.memory_space<vmem>>, vector<8x1xf32>,
    return
  }
}

</mosaic_0001>

<bundles_post_ra>
// kernel: birnn_forward.1
= control target key start
LH: loop header
LB: loop body
LE: loop exit
PB: predicated region body
PF: predicated region fallthrough
CT: control target
= control target key end

     0   :  { %vm77_vm0 = vcmask 1041408   ;;  %vm52_vm1 = vcmask 80896   ;;  %s2552_s1 = inlined_call_operand.vmem [shape: f32[10,512], index: 1, kind: input, shape index: {}]   ;;  %s2553_s0 = inlined_call_operand.vmem [shape: f32[64,10], index: 0, kind: input, shape index: {}]   ;;  %s2554_s3 = inlined_call_operand.vmem [shape: bf16[128,512], index: 3, kind: input, shape index: {}]   ;;  %s2555_s2 = inlined_call_operand.vmem [shape: f32[1,512], index: 2, kind: input, shape index: {}]   ;;  %s2556_s4 = inlined_call_operand.vmem [shape: f32[1,128], index: 4, kind: input, shape index: {}]   ;;  %s2557_s5 = inlined_call_operand.<no memory space> [shape: f32[1,1], index: 5, kind: input, shape index: {}]   ;;  %s2558_s6 = inlined_call_operand.vmem [shape: f32[8,1], index: 6, kind: output, shape index: {}]  }
   0x1   :  { %v38_v0 = vld [vmem:[%s2552_s1 + $0x20] sm:$0x3]  ;;  %v39_v1 = vld [vmem:[%s2552_s1 + $0x28] sm:$0x3]  ;;  %v40_v2 = vld [vmem:[%s2552_s1 + $0x30] sm:$0x3] }
   0x2   :  { %1423 = vmatpush.msk.msra.mxu0 %vm77_vm0, %v38_v0  ;;  %1432 = vmatpush.msk.msra.mxu1 %vm77_vm0, %v39_v1  ;;  %v41_v3 = vld [vmem:[%s2552_s1 + $0x38] sm:$0x3]  ;;  %v34_v4 = vld [vmem:[%s2552_s1] sm:$0xff]  ;;  %v35_v5 = vld [vmem:[%s2552_s1 + $0x8] sm:$0xff] }
   0x3   :  { %1441 = vmatpush.msk.msra.mxu2 %vm77_vm0, %v40_v2  ;;  %1450 = vmatpush.msk.msra.mxu3 %vm77_vm0, %v41_v3  ;;  %v36_v6 = vld [vmem:[%s2552_s1 + $0x10] sm:$0xff]  ;;  %v37_v7 = vld [vmem:[%s2552_s1 + $0x18] sm:$0xff]  ;;  %v26_v8 = vld [vmem:[%s2553_s0] sm:$0xff] }
   0x4   :  { %105 = vmatpush.msra.mxu0 %v34_v4  ;;  %146 = vmatpush.msra.mxu1 %v35_v5  ;;  %v1573_v9 = vld [vmem:[%s2554_s3 + $0xe0] sm:$0xf]  ;;  %v1641_v10 = vld [vmem:[%s2554_s3 + $0xec] sm:$0xf0]  ;;  %v1639_v11 = vld [vmem:[%s2554_s3 + $0xe4] sm:$0xf] }
   0x5   :  { %187 = vmatpush.msra.mxu2 %v36_v6  ;;  %228 = vmatpush.msra.mxu3 %v37_v7  ;;  %v1846_v12 = vor.u32 %v1641_v10, %v1573_v9  ;;  %v1575_v13 = vld [vmem:[%s2554_s3 + $0xf0] sm:$0xf0]  ;;  %v1581_v14 = vld [vmem:[%s2554_s3 + $0xe8] sm:$0xf]  ;;  %v1642_v15 = vld [vmem:[%s2554_s3 + $0xf4] sm:$0xf0] }
   0x6   :  { %1424 = vmatmul.msk.f32.vlgmr.msra.gmra.mxu0 %vm52_vm1, %v26_v8  ;;  %1433 = vmatmul.msk.f32.vlgmr.msra.gmra.mxu1 %vm52_vm1, %v26_v8  ;;  %v1859_v16 = vor.u32 %v1639_v11, %v1575_v13  ;;  %v1861_v17 = vor.u32 %v1642_v15, %v1581_v14  ;;  %v1557_v18 = vld [vmem:[%s2554_s3 + $0xc0] sm:$0xf]  ;;  %v1637_v19 = vld [vmem:[%s2554_s3 + $0xcc] sm:$0xf0]  ;;  %v1635_v20 = vld [vmem:[%s2554_s3 + $0xc4] sm:$0xf] }
   0x7   :  { %1442 = vmatmul.msk.f32.vlgmr.msra.gmra.mxu2 %vm52_vm1, %v26_v8  ;;  %1451 = vmatmul.msk.f32.vlgmr.msra.gmra.mxu3 %vm52_vm1, %v26_v8  ;;  %v1559_v21 = vld [vmem:[%s2554_s3 + $0xd0] sm:$0xf0]  ;;  %v1565_v22 = vld [vmem:[%s2554_s3 + $0xc8] sm:$0xf]  ;;  %v1882_v23 = vor.u32 %v1637_v19, %v1557_v18  ;;  %v1638_v25 = vld [vmem:[%s2554_s3 + $0xd4] sm:$0xf0] }
   0x8   :  { %446 = vmatpush.bf16.msrb.mxu0 %v1846_v12  ;;  %459 = vmatpush.bf16.msrb.mxu1 %v1859_v16  ;;  %v1884_v24 = vor.u32 %v1635_v20, %v1559_v21  ;;  %v1640_v26 = vld [vmem:[%s2554_s3 + $0xec] sm:$0xf]  ;;  %v1583_v27 = vld [vmem:[%s2554_s3 + $0xf8] sm:$0xf0]  ;;  %v1899_v29 = vor.u32 %v1638_v25, %v1565_v22  ;;  %v1541_v31 = vld [vmem:[%s2554_s3 + $0xa0] sm:$0xf] }
   0x9   :  { %472 = vmatpush.bf16.msrb.mxu2 %v1861_v17  ;;  %v27_v28 = vld [vmem:[%s2553_s0 + $0x8] sm:$0xff]  ;;  %v1901_v30 = vor.u32 %v1640_v26, %v1583_v27  ;;  %v1633_v32 = vld [vmem:[%s2554_s3 + $0xac] sm:$0xf0]  ;;  %v1631_v33 = vld [vmem:[%s2554_s3 + $0xa4] sm:$0xf] }
   0xa   :  { %v1543_v34 = vld [vmem:[%s2554_s3 + $0xb0] sm:$0xf0]  ;;  %v1549_v35 = vld [vmem:[%s2554_s3 + $0xa8] sm:$0xf]  ;;  %v1634_v36 = vld [vmem:[%s2554_s3 + $0xb4] sm:$0xf0]  ;;  %v1930_v39 = vor.u32 %v1633_v32, %v1541_v31 }
   0xb   :  { %485 = vmatpush.bf16.msrb.mxu3 %v1901_v30  ;;  %v1636_v37 = vld [vmem:[%s2554_s3 + $0xcc] sm:$0xf]  ;;  %v1567_v38 = vld [vmem:[%s2554_s3 + $0xd8] sm:$0xf0]  ;;  %v1932_v40 = vor.u32 %v1631_v33, %v1543_v34  ;;  %v1525_v41 = vld [vmem:[%s2554_s3 + $0x80] sm:$0xf]  ;;  %v1941_v43 = vor.u32 %v1634_v36, %v1549_v35 }
   0xc   :  { %447 = vmatpush.bf16.msrb.mxu0 %v1882_v23  ;;  %460 = vmatpush.bf16.msrb.mxu1 %v1884_v24  ;;  %v1629_v42 = vld [vmem:[%s2554_s3 + $0x8c] sm:$0xf0]  ;;  %v1943_v44 = vor.u32 %v1636_v37, %v1567_v38  ;;  %v1627_v45 = vld [vmem:[%s2554_s3 + $0x84] sm:$0xf]  ;;  %v1527_v46 = vld [vmem:[%s2554_s3 + $0x90] sm:$0xf0] }
   0xd   :  { %473 = vmatpush.bf16.msrb.mxu2 %v1899_v29  ;;  %v1533_v47 = vld [vmem:[%s2554_s3 + $0x88] sm:$0xf]  ;;  %v1630_v48 = vld [vmem:[%s2554_s3 + $0x94] sm:$0xf0]  ;;  %v1632_v49 = vld [vmem:[%s2554_s3 + $0xac] sm:$0xf]  ;;  %v1969_v51 = vor.u32 %v1629_v42, %v1525_v41  ;;  %v1971_v52 = vor.u32 %v1627_v45, %v1527_v46 }
   0xe   :  { %1425 = vmatmul.msk.f32.gmra.mxu0 %vm52_vm1, %v27_v28  ;;  %1434 = vmatmul.msk.f32.gmra.mxu1 %vm52_vm1, %v27_v28  ;;  %v1551_v50 = vld [vmem:[%s2554_s3 + $0xb8] sm:$0xf0]  ;;  %v1509_v53 = vld [vmem:[%s2554_s3 + $0x60] sm:$0xf]  ;;  %v1625_v54 = vld [vmem:[%s2554_s3 + $0x6c] sm:$0xf0]  ;;  %v1981_v55 = vor.u32 %v1630_v48, %v1533_v47 }
   0xf   :  { %1443 = vmatmul.msk.f32.gmra.mxu2 %vm52_vm1, %v27_v28  ;;  %1452 = vmatmul.msk.f32.gmra.mxu3 %vm52_vm1, %v27_v28  ;;  %v1983_v56 = vor.u32 %v1632_v49, %v1551_v50  ;;  %v1623_v57 = vld [vmem:[%s2554_s3 + $0x64] sm:$0xf]  ;;  %v1511_v58 = vld [vmem:[%s2554_s3 + $0x70] sm:$0xf0]  ;;  %v1517_v59 = vld [vmem:[%s2554_s3 + $0x68] sm:$0xf]  ;;  %v2008_v0 = vor.u32 %v1625_v54, %v1509_v53 }
  0x10   :  { %448 = vmatpush.bf16.msrb.mxu0 %v1930_v39  ;;  %461 = vmatpush.bf16.msrb.mxu1 %v1932_v40  ;;  %v1626_v60 = vld [vmem:[%s2554_s3 + $0x74] sm:$0xf0]  ;;  %v1628_v61 = vld [vmem:[%s2554_s3 + $0x8c] sm:$0xf]  ;;  %v1535_v62 = vld [vmem:[%s2554_s3 + $0x98] sm:$0xf0]  ;;  %v2010_v1 = vor.u32 %v1623_v57, %v1511_v58 }
  0x11   :  { %474 = vmatpush.bf16.msrb.mxu2 %v1941_v43  ;;  %486 = vmatpush.bf16.msrb.mxu3 %v1943_v44  ;;  %v28_v63 = vld [vmem:[%s2553_s0 + $0x10] sm:$0xff]  ;;  %v1493_v2 = vld [vmem:[%s2554_s3 + $0x40] sm:$0xf]  ;;  %v2020_v4 = vor.u32 %v1626_v60, %v1517_v59  ;;  %v2022_v5 = vor.u32 %v1628_v61, %v1535_v62  ;;  %v1619_v6 = vld [vmem:[%s2554_s3 + $0x44] sm:$0xf] }
  0x12   :  { %v1621_v3 = vld [vmem:[%s2554_s3 + $0x4c] sm:$0xf0]  ;;  %v1495_v7 = vld [vmem:[%s2554_s3 + $0x50] sm:$0xf0]  ;;  %v1501_v8 = vld [vmem:[%s2554_s3 + $0x48] sm:$0xf] }
  0x13   :  { %v1622_v9 = vld [vmem:[%s2554_s3 + $0x54] sm:$0xf0]  ;;  %v1624_v10 = vld [vmem:[%s2554_s3 + $0x6c] sm:$0xf]  ;;  %v1519_v11 = vld [vmem:[%s2554_s3 + $0x78] sm:$0xf0]  ;;  %v2048_v13 = vor.u32 %v1621_v3, %v1493_v2  ;;  %v2050_v14 = vor.u32 %v1619_v6, %v1495_v7 }
  0x14   :  { %449 = vmatpush.bf16.msrb.mxu0 %v1969_v51  ;;  %462 = vmatpush.bf16.msrb.mxu1 %v1971_v52  ;;  %v1477_v15 = vld [vmem:[%s2554_s3 + $0x20] sm:$0xf]  ;;  %v1617_v18 = vld [vmem:[%s2554_s3 + $0x2c] sm:$0xf0]  ;;  %v2060_v19 = vor.u32 %v1622_v9, %v1501_v8  ;;  %v2062_v20 = vor.u32 %v1624_v10, %v1519_v11  ;;  %v1615_v21 = vld [vmem:[%s2554_s3 + $0x24] sm:$0xf] }
  0x15   :  { %475 = vmatpush.bf16.msrb.mxu2 %v1981_v55  ;;  %487 = vmatpush.bf16.msrb.mxu3 %v1983_v56  ;;  %v1479_v22 = vld [vmem:[%s2554_s3 + $0x30] sm:$0xf0]  ;;  %v1485_v25 = vld [vmem:[%s2554_s3 + $0x28] sm:$0xf]  ;;  %v1618_v26 = vld [vmem:[%s2554_s3 + $0x34] sm:$0xf0]  ;;  %v2087_v32 = vor.u32 %v1617_v18, %v1477_v15 }
  0x16   :  { %1426 = vmatmul.msk.f32.gmra.mxu0 %vm52_vm1, %v28_v63  ;;  %1435 = vmatmul.msk.f32.gmra.mxu1 %vm52_vm1, %v28_v63  ;;  %v1620_v27 = vld [vmem:[%s2554_s3 + $0x4c] sm:$0xf]  ;;  %v1503_v28 = vld [vmem:[%s2554_s3 + $0x58] sm:$0xf0]  ;;  %v2089_v33 = vor.u32 %v1615_v21, %v1479_v22  ;;  %v2093_v34 = vor.u32 %v1618_v26, %v1485_v25  ;;  %v1461_v38 = vld [vmem:[%s2554_s3] sm:$0xf] }
  0x17   :  { %1444 = vmatmul.msk.f32.gmra.mxu2 %vm52_vm1, %v28_v63  ;;  %1453 = vmatmul.msk.f32.gmra.mxu3 %vm52_vm1, %v28_v63  ;;  %v29_v31 = vld [vmem:[%s2553_s0 + $0x18] sm:$0xff]  ;;  %v2095_v35 = vor.u32 %v1620_v27, %v1503_v28  ;;  %v1616_v36 = vld [vmem:[%s2554_s3 + $0x2c] sm:$0xf]  ;;  %v1613_v41 = vld [vmem:[%s2554_s3 + $0xc] sm:$0xf0]  ;;  %v1774_v63 = vmov 0  }
  0x18   :  { %450 = vmatpush.bf16.msrb.mxu0 %v2008_v0  ;;  %463 = vmatpush.bf16.msrb.mxu1 %v2010_v1  ;;  %v1487_v37 = vld [vmem:[%s2554_s3 + $0x38] sm:$0xf0]  ;;  %v1611_v42 = vld [vmem:[%s2554_s3 + $0x4] sm:$0xf]  ;;  %v2118_v45 = vor.u32 %v1613_v41, %v1461_v38  ;;  %v1463_v46 = vld [vmem:[%s2554_s3 + $0x10] sm:$0xf0] }
  0x19   :  { %476 = vmatpush.bf16.msrb.mxu2 %v2020_v4  ;;  %488 = vmatpush.bf16.msrb.mxu3 %v2022_v5  ;;  %v1469_v47 = vld [vmem:[%s2554_s3 + $0x8] sm:$0xf]  ;;  %v1614_v48 = vld [vmem:[%s2554_s3 + $0x14] sm:$0xf0]  ;;  %v2131_v49 = vor.u32 %v1611_v42, %v1463_v46  ;;  %v2133_v50 = vor.u32 %v1616_v36, %v1487_v37  ;;  %v1612_v54 = vld [vmem:[%s2554_s3 + $0xc] sm:$0xf] }
  0x1a   :  { %v2135_v53 = vor.u32 %v1614_v48, %v1469_v47  ;;  %v1471_v57 = vld [vmem:[%s2554_s3 + $0x18] sm:$0xf0]  ;;  %v30_v58 = vld [vmem:[%s2553_s0 + $0x20] sm:$0xff]  ;;  %v31_v60 = vld [vmem:[%s2553_s0 + $0x28] sm:$0xff] }
  0x1b   :  { %v2150_v59 = vor.u32 %v1612_v54, %v1471_v57  ;;  %v32_v61 = vld [vmem:[%s2553_s0 + $0x30] sm:$0xff]  ;;  %v33_v62 = vld [vmem:[%s2553_s0 + $0x38] sm:$0xff]  ;;  %v42_v6 = vld [vmem:[%s2555_s2] sm:$0xf] }
  0x1c   :  { %451 = vmatpush.bf16.msrb.mxu0 %v2048_v13  ;;  %464 = vmatpush.bf16.msrb.mxu1 %v2050_v14  ;;  %v44_v7 = vperm.slane %v42_v6, 0  ;;  %v45_v8 = vperm.slane %v42_v6, 1  ;;  %v2253_v22 = vperm.slane %v42_v6, 2  ;;  %v2255_v25 = vperm.slane %v42_v6, 3 }
  0x1d   :  { %477 = vmatpush.bf16.msrb.mxu2 %v2060_v19  ;;  %489 = vmatpush.bf16.msrb.mxu3 %v2062_v20 }
  0x1e   :  { %1427 = vmatmul.msk.f32.gmra.mxu0 %vm52_vm1, %v29_v31  ;;  %1436 = vmatmul.msk.f32.gmra.mxu1 %vm52_vm1, %v29_v31 }
  0x1f   :  { %1445 = vmatmul.msk.f32.gmra.mxu2 %vm52_vm1, %v29_v31  ;;  %1454 = vmatmul.msk.f32.gmra.mxu3 %vm52_vm1, %v29_v31 }
  0x20   :  { %452 = vmatpush.bf16.msrb.mxu0 %v2087_v32  ;;  %465 = vmatpush.bf16.msrb.mxu1 %v2089_v33 }
  0x21   :  { %478 = vmatpush.bf16.msrb.mxu2 %v2093_v34  ;;  %490 = vmatpush.bf16.msrb.mxu3 %v2095_v35 }
  0x24   :  { %453 = vmatpush.bf16.msrb.mxu0 %v2118_v45  ;;  %466 = vmatpush.bf16.msrb.mxu1 %v2131_v49 }
  0x25   :  { %491 = vmatpush.bf16.msrb.mxu3 %v2133_v50  ;;  %479 = vmatpush.bf16.msrb.mxu2 %v2135_v53 }
  0x26   :  { %1428 = vmatmul.msk.f32.gmra.mxu0 %vm52_vm1, %v30_v58  ;;  %1437 = vmatmul.msk.f32.gmra.mxu1 %vm52_vm1, %v30_v58 }
  0x27   :  { %1446 = vmatmul.msk.f32.gmra.mxu2 %vm52_vm1, %v30_v58  ;;  %1455 = vmatmul.msk.f32.gmra.mxu3 %vm52_vm1, %v30_v58 }
  0x28   :  { %566 = vmatpush.bf16.msra.mxu0 %v1846_v12  ;;  %579 = vmatpush.bf16.msra.mxu1 %v1859_v16 }
  0x29   :  { %492 = vmatpush.bf16.msrb.mxu3 %v2150_v59  ;;  %592 = vmatpush.bf16.msra.mxu2 %v1861_v17 }
  0x2c   :  { %567 = vmatpush.bf16.msra.mxu0 %v1882_v23  ;;  %580 = vmatpush.bf16.msra.mxu1 %v1884_v24 }
  0x2d   :  { %605 = vmatpush.bf16.msra.mxu3 %v1901_v30  ;;  %593 = vmatpush.bf16.msra.mxu2 %v1899_v29 }
  0x2e   :  { %1429 = vmatmul.msk.f32.gmra.mxu0 %vm52_vm1, %v31_v60  ;;  %1438 = vmatmul.msk.f32.gmra.mxu1 %vm52_vm1, %v31_v60 }
  0x2f   :  { %1447 = vmatmul.msk.f32.gmra.mxu2 %vm52_vm1, %v31_v60  ;;  %1456 = vmatmul.msk.f32.gmra.mxu3 %vm52_vm1, %v31_v60 }
  0x30   :  { %568 = vmatpush.bf16.msra.mxu0 %v1930_v39  ;;  %581 = vmatpush.bf16.msra.mxu1 %v1932_v40 }
  0x31   :  { %606 = vmatpush.bf16.msra.mxu3 %v1943_v44  ;;  %594 = vmatpush.bf16.msra.mxu2 %v1941_v43 }
  0x34   :  { %569 = vmatpush.bf16.msra.mxu0 %v1969_v51  ;;  %582 = vmatpush.bf16.msra.mxu1 %v1971_v52 }
  0x35   :  { %607 = vmatpush.bf16.msra.mxu3 %v1983_v56  ;;  %595 = vmatpush.bf16.msra.mxu2 %v1981_v55 }
  0x36   :  { %1430 = vmatmul.msk.f32.gmra.mxu0 %vm52_vm1, %v32_v61  ;;  %1439 = vmatmul.msk.f32.gmra.mxu1 %vm52_vm1, %v32_v61 }
  0x37   :  { %1448 = vmatmul.msk.f32.gmra.mxu2 %vm52_vm1, %v32_v61  ;;  %1457 = vmatmul.msk.f32.gmra.mxu3 %vm52_vm1, %v32_v61 }
  0x38   :  { %570 = vmatpush.bf16.msra.mxu0 %v2008_v0  ;;  %583 = vmatpush.bf16.msra.mxu1 %v2010_v1 }
  0x39   :  { %608 = vmatpush.bf16.msra.mxu3 %v2022_v5  ;;  %596 = vmatpush.bf16.msra.mxu2 %v2020_v4 }
  0x3c   :  { %571 = vmatpush.bf16.msra.mxu0 %v2048_v13  ;;  %584 = vmatpush.bf16.msra.mxu1 %v2050_v14 }
  0x3d   :  { %609 = vmatpush.bf16.msra.mxu3 %v2062_v20  ;;  %597 = vmatpush.bf16.msra.mxu2 %v2060_v19 }
  0x3e   :  { %1431 = vmatmul.msk.f32.gmra.mxu0 %vm52_vm1, %v33_v62  ;;  %1440 = vmatmul.msk.f32.gmra.mxu1 %vm52_vm1, %v33_v62 }
  0x3f   :  { %1449 = vmatmul.msk.f32.gmra.mxu2 %vm52_vm1, %v33_v62  ;;  %1458 = vmatmul.msk.f32.gmra.mxu3 %vm52_vm1, %v33_v62 }
  0x40   :  { %572 = vmatpush.bf16.msra.mxu0 %v2087_v32  ;;  %585 = vmatpush.bf16.msra.mxu1 %v2089_v33 }
  0x41   :  { %610 = vmatpush.bf16.msra.mxu3 %v2095_v35  ;;  %598 = vmatpush.bf16.msra.mxu2 %v2093_v34 }
  0x44   :  { %573 = vmatpush.bf16.msra.mxu0 %v2118_v45  ;;  %586 = vmatpush.bf16.msra.mxu1 %v2131_v49 }
  0x45   :  { %611 = vmatpush.bf16.msra.mxu3 %v2133_v50  ;;  %599 = vmatpush.bf16.msra.mxu2 %v2135_v53 }
  0x46   :  { %454 = vmatmul.bf16.vlgmr.msrb.gmra.mxu0 %v1774_v63  ;;  %467 = vmatmul.bf16.vlgmr.msrb.gmra.mxu1 %v1774_v63 }
  0x47   :  { %480 = vmatmul.bf16.vlgmr.msrb.gmra.mxu2 %v1774_v63  ;;  %493 = vmatmul.bf16.vlgmr.msrb.gmra.mxu3 %v1774_v63 }
  0x48   :  { %686 = vmatpush.bf16.msrb.mxu0 %v1846_v12  ;;  %699 = vmatpush.bf16.msrb.mxu1 %v1859_v16 }
  0x49   :  { %612 = vmatpush.bf16.msra.mxu3 %v2150_v59  ;;  %712 = vmatpush.bf16.msrb.mxu2 %v1861_v17 }
  0x4c   :  { %687 = vmatpush.bf16.msrb.mxu0 %v1882_v23  ;;  %700 = vmatpush.bf16.msrb.mxu1 %v1884_v24 }
  0x4d   :  { %725 = vmatpush.bf16.msrb.mxu3 %v1901_v30  ;;  %713 = vmatpush.bf16.msrb.mxu2 %v1899_v29 }
  0x50   :  { %688 = vmatpush.bf16.msrb.mxu0 %v1930_v39  ;;  %701 = vmatpush.bf16.msrb.mxu1 %v1932_v40 }
  0x51   :  { %726 = vmatpush.bf16.msrb.mxu3 %v1943_v44  ;;  %714 = vmatpush.bf16.msrb.mxu2 %v1941_v43 }
  0x54   :  { %689 = vmatpush.bf16.msrb.mxu0 %v1969_v51  ;;  %702 = vmatpush.bf16.msrb.mxu1 %v1971_v52 }
  0x55   :  { %727 = vmatpush.bf16.msrb.mxu3 %v1983_v56  ;;  %715 = vmatpush.bf16.msrb.mxu2 %v1981_v55 }
  0x58   :  { %690 = vmatpush.bf16.msrb.mxu0 %v2008_v0  ;;  %703 = vmatpush.bf16.msrb.mxu1 %v2010_v1 }
  0x59   :  { %728 = vmatpush.bf16.msrb.mxu3 %v2022_v5  ;;  %716 = vmatpush.bf16.msrb.mxu2 %v2020_v4 }
  0x5c   :  { %691 = vmatpush.bf16.msrb.mxu0 %v2048_v13  ;;  %704 = vmatpush.bf16.msrb.mxu1 %v2050_v14 }
  0x5d   :  { %729 = vmatpush.bf16.msrb.mxu3 %v2062_v20  ;;  %717 = vmatpush.bf16.msrb.mxu2 %v2060_v19 }
  0x60   :  { %692 = vmatpush.bf16.msrb.mxu0 %v2087_v32  ;;  %705 = vmatpush.bf16.msrb.mxu1 %v2089_v33 }
  0x61   :  { %730 = vmatpush.bf16.msrb.mxu3 %v2095_v35  ;;  %718 = vmatpush.bf16.msrb.mxu2 %v2093_v34 }
  0x64   :  { %693 = vmatpush.bf16.msrb.mxu0 %v2118_v45  ;;  %706 = vmatpush.bf16.msrb.mxu1 %v2131_v49 }
  0x65   :  { %731 = vmatpush.bf16.msrb.mxu3 %v2133_v50  ;;  %719 = vmatpush.bf16.msrb.mxu2 %v2135_v53 }
  0x69   :  { %732 = vmatpush.bf16.msrb.mxu3 %v2150_v59 }
  0x83   :  { %v107_v2 = vpop.f32.mrf.mxu0  ;;  %v148_v3 = vpop.f32.mrf.mxu1 }
  0x8a   :  { %v2245_v9 = vpop.f32.mrf.mxu2  ;;  %v2247_v10 = vpop.f32.mrf.mxu3 }
  0x8b   :  { %v110_v11 = vpop.f32.mrf.mxu0  ;;  %v151_v15 = vpop.f32.mrf.mxu1 }
  0x8c   :  { %v2249_v18 = vadd.f32 %v110_v11, %v44_v7  ;;  %v2251_v21 = vadd.f32 %v151_v15, %v45_v8 }
  0x92   :  { %v192_v26 = vpop.f32.mrf.mxu2  ;;  %v233_v27 = vpop.f32.mrf.mxu3 }
  0x93   :  { %v2258_v28 = vadd.f32 %v192_v26, %v2253_v22  ;;  %v2261_v31 = vadd.f32 %v233_v27, %v2255_v25  ;;  %v113_v36 = vpop.f32.mrf.mxu0  ;;  %v154_v37 = vpop.f32.mrf.mxu1 }
  0x94   :  { %v2263_v38 = vadd.f32 %v113_v36, %v44_v7  ;;  %v2265_v41 = vadd.f32 %v154_v37, %v45_v8 }
  0x9a   :  { %v195_v42 = vpop.f32.mrf.mxu2  ;;  %v236_v46 = vpop.f32.mrf.mxu3 }
  0x9b   :  { %v2268_v47 = vadd.f32 %v195_v42, %v2253_v22  ;;  %v2271_v48 = vadd.f32 %v236_v46, %v2255_v25  ;;  %v116_v54 = vpop.f32.mrf.mxu0  ;;  %v157_v57 = vpop.f32.mrf.mxu1 }
  0x9c   :  { %v2273_v58 = vadd.f32 %v116_v54, %v44_v7  ;;  %v2275_v60 = vadd.f32 %v157_v57, %v45_v8 }
  0x9d   :  { %2559 = vst [vmem:[#allocation3_spill] sm:$0xff] %v2268_v47 }
  0x9e   :  { %2560 = vst [vmem:[#allocation4_spill] sm:$0xff] %v2271_v48 }
  0x9f   :  { %2561 = vst [vmem:[#allocation5_spill] sm:$0xff] %v2273_v58 }
  0xa0   :  { %2562 = vst [vmem:[#allocation6_spill] sm:$0xff] %v2275_v60 }
  0xa2   :  { %v198_v61 = vpop.f32.mrf.mxu2  ;;  %v239_v62 = vpop.f32.mrf.mxu3 }
  0xa3   :  { %v2278_v63 = vadd.f32 %v198_v61, %v2253_v22  ;;  %v2281_v6 = vadd.f32 %v239_v62, %v2255_v25  ;;  %v119_v11 = vpop.f32.mrf.mxu0  ;;  %v160_v15 = vpop.f32.mrf.mxu1 }
  0xa4   :  { %v2283_v26 = vadd.f32 %v119_v11, %v44_v7  ;;  %v2285_v27 = vadd.f32 %v160_v15, %v45_v8 }
  0xa5   :  { %2563 = vst [vmem:[#allocation7_spill] sm:$0xff] %v2278_v63 }
  0xa6   :  { %2564 = vst [vmem:[#allocation8_spill] sm:$0xff] %v2281_v6 }
  0xa7   :  { %2565 = vst [vmem:[#allocation9_spill] sm:$0xff] %v2283_v26 }
  0xa8   :  { %2566 = vst [vmem:[#allocation10_spill] sm:$0xff] %v2285_v27 }
  0xaa   :  { %v201_v36 = vpop.f32.mrf.mxu2  ;;  %v242_v37 = vpop.f32.mrf.mxu3 }
  0xab   :  { %v2288_v42 = vadd.f32 %v201_v36, %v2253_v22  ;;  %v2291_v46 = vadd.f32 %v242_v37, %v2255_v25  ;;  %v122_v54 = vpop.f32.mrf.mxu0  ;;  %v163_v57 = vpop.f32.mrf.mxu1 }
  0xac   :  { %v2293_v61 = vadd.f32 %v122_v54, %v44_v7  ;;  %v2295_v62 = vadd.f32 %v163_v57, %v45_v8 }
  0xad   :  { %2567 = vst [vmem:[#allocation11_spill] sm:$0xff] %v2288_v42 }
  0xae   :  { %2568 = vst [vmem:[#allocation12_spill] sm:$0xff] %v2291_v46 }
  0xaf   :  { %2569 = vst [vmem:[#allocation13_spill] sm:$0xff] %v2293_v61  ;;  %v149_v61 = vadd.f32 %v148_v3, %v45_v8 }
  0xb0   :  { %2570 = vst [vmem:[#allocation14_spill] sm:$0xff] %v2295_v62 }
  0xb2   :  { %v204_v6 = vpop.f32.mrf.mxu2  ;;  %v245_v63 = vpop.f32.mrf.mxu3 }
  0xb3   :  { %v2298_v11 = vadd.f32 %v204_v6, %v2253_v22  ;;  %v2301_v15 = vadd.f32 %v245_v63, %v2255_v25  ;;  %v125_v27 = vpop.f32.mrf.mxu0  ;;  %v166_v36 = vpop.f32.mrf.mxu1 }
  0xb4   :  { %v2303_v42 = vadd.f32 %v125_v27, %v44_v7  ;;  %v2305_v37 = vadd.f32 %v166_v36, %v45_v8 }
  0xb5   :  { %2571 = vst [vmem:[#allocation15_spill] sm:$0xff] %v2298_v11 }
  0xb6   :  { %2572 = vst [vmem:[#allocation16_spill] sm:$0xff] %v2301_v15  ;;  %v108_v15 = vadd.f32 %v107_v2, %v44_v7 }
  0xb7   :  { %2573 = vst [vmem:[#allocation17_spill] sm:$0xff] %v2303_v42 }
  0xb8   :  { %2574 = vst [vmem:[#allocation18_spill] sm:$0xff] %v2305_v37 }
  0xba   :  { %v207_v46 = vpop.f32.mrf.mxu2  ;;  %v248_v26 = vpop.f32.mrf.mxu3 }
  0xbb   :  { %v2308_v54 = vadd.f32 %v207_v46, %v2253_v22  ;;  %v2311_v57 = vadd.f32 %v248_v26, %v2255_v25  ;;  %v128_v62 = vpop.f32.mrf.mxu0  ;;  %v169_v6 = vpop.f32.mrf.mxu1 }
  0xbc   :  { %v2313_v11 = vadd.f32 %v128_v62, %v44_v7  ;;  %v2315_v63 = vadd.f32 %v169_v6, %v45_v8  ;;  %v190_v62 = vadd.f32 %v2245_v9, %v2253_v22  ;;  %v231_v9 = vadd.f32 %v2247_v10, %v2255_v25 }
  0xbd   :  { %2575 = vst [vmem:[#allocation19_spill] sm:$0xff] %v2308_v54 }
  0xbe   :  { %2576 = vst [vmem:[#allocation20_spill] sm:$0xff] %v2311_v57 }
  0xbf   :  { %2577 = vst [vmem:[#allocation21_spill] sm:$0xff] %v2313_v11 }
  0xc0   :  { %2578 = vst [vmem:[#allocation22_spill] sm:$0xff] %v2315_v63 }
  0xc2   :  { %v210_v27 = vpop.f32.mrf.mxu2  ;;  %v251_v42 = vpop.f32.mrf.mxu3 }
  0xc3   :  { %v2318_v36 = vadd.f32 %v210_v27, %v2253_v22  ;;  %v2321_v37 = vadd.f32 %v251_v42, %v2255_v25  ;;  %v455_v46 = vpop.f32.mrf.mxu0  ;;  %v468_v54 = vpop.f32.mrf.mxu1 }
  0xc4   :  { %v498_v26 = vadd.f32 %v455_v46, %v108_v15  ;;  %v499_v57 = vadd.f32 %v468_v54, %v149_v61 }
  0xc5   :  { %2579 = vst [vmem:[#allocation23_spill] sm:$0xff] %v2318_v36 }
  0xc6   :  { %2580 = vst [vmem:[#allocation24_spill] sm:$0xff] %v2321_v37  ;;  %v1587_v60 = vmul.f32 -1.442695, %v498_v26  ;;  %v1588_v58 = vmul.f32 -1.442695, %v499_v57 }
  0xc8   :  { %1646 = vpow2.f32 %v1587_v60 }
  0xc9   :  { %1648 = vpow2.f32 %v1588_v58 }
  0xca   :  { %v481_v2 = vpop.f32.mrf.mxu2  ;;  %v494_v3 = vpop.f32.mrf.mxu3 }
  0xcb   :  { %v500_v7 = vadd.f32 %v481_v2, %v190_v62  ;;  %v457_v8 = vpop.f32.mrf.mxu0  ;;  %v470_v6 = vpop.f32.mrf.mxu1  ;;  %v501_v54 = vadd.f32 %v494_v3, %v231_v9 }
  0xcd   :  { %v1589_v27 = vmul.f32 -1.442695, %v500_v7 }
  0xce   :  { %v1647_v36 = vpop.eup %1646 }
  0xcf   :  { %v1649_v42 = vpop.eup %1648  ;;  %v511_v37 = vadd.f32 1.0, %v1647_v36  ;;  %1650 = vpow2.f32 %v1589_v27 }
  0xd0   :  { %v512_v63 = vadd.f32 1.0, %v1649_v42 }
  0xd1   :  { %1652 = vrcp.f32 %v511_v37  ;;  %v525_v36 = vand.u32 2147483648, %v511_v37  ;;  %v523_v6 = vand.u32 2147483647, %v511_v37  ;;  %vm519_vm4 = vweird.f32 %v511_v37 }
  0xd2   :  { %1654 = vrcp.f32 %v512_v63  ;;  %v483_v61 = vpop.f32.mrf.mxu2  ;;  %v496_v15 = vpop.f32.mrf.mxu3  ;;  %v540_v7 = vand.u32 2147483648, %v512_v63  ;;  %v538_v42 = vand.u32 2147483647, %v512_v63  ;;  %vm534_vm5 = vweird.f32 %v512_v63 }
  0xd3   :  { %v526_v3 = vor.u32 1.1754944e-38, %v525_v36  ;;  %vm524_vm7 = vcmp.eq.f32.partialorder %v523_v6, 8.507059e+37 }
  0xd4   :  { %vm539_vm9 = vcmp.eq.f32.partialorder %v538_v42, 8.507059e+37 }
  0xd5   :  { %v1651_v60 = vpop.eup %1650 }
  0xd6   :  { %v513_v22 = vadd.f32 1.0, %v1651_v60  ;;  %v541_v60 = vor.u32 1.1754944e-38, %v540_v7 }
  0xd7   :  { %v1653_v58 = vpop.eup %1652 }
  0xd8   :  { %v1655_v57 = vpop.eup %1654  ;;  %v515_v46 = vmul.f32 %v1653_v58, %v511_v37  ;;  %1656 = vrcp.f32 %v513_v22  ;;  %vm520_vm2 = vweird.f32 %v1653_v58  ;;  %vm549_vm11 = vweird.f32 %v513_v22 }
  0xd9   :  { %v530_v26 = vmul.f32 %v1655_v57, %v512_v63  ;;  %1658 = vtanh.f32 %v501_v54  ;;  %vm535_vm3 = vweird.f32 %v1655_v57  ;;  %vm521_vm6 = vmor %vm519_vm4, %vm520_vm2  ;;  %v555_v63 = vand.u32 2147483648, %v513_v22 }
  0xda   :  { %v516_v62 = vsub.f32 1.0, %v515_v46  ;;  %vm536_vm8 = vmor %vm534_vm5, %vm535_vm3 }
  0xdb   :  { %v531_v2 = vsub.f32 1.0, %v530_v26  ;;  %v556_v7 = vor.u32 1.1754944e-38, %v555_v63 }
  0xdc   :  { %v517_v8 = vmul.f32 %v1653_v58, %v516_v62 }
  0xdd   :  { %v532_v27 = vmul.f32 %v1655_v57, %v531_v2 }
  0xde   :  { %v1657_v61 = vpop.eup %1656  ;;  %v518_v10 = vadd.f32 %v1653_v58, %v517_v8 }
  0xdf   :  { %v545_v25 = vmul.f32 %v1657_v61, %v513_v22  ;;  %v533_v15 = vadd.f32 %v1655_v57, %v532_v27  ;;  %v1659_v54 = vpop.eup %1658  ;;  %vm550_vm10 = vweird.f32 %v1657_v61 }
  0xe0   :  { %v522_v9 = vsel %vm521_vm6, %v1653_v58, %v518_v10  ;;  %v553_v58 = vand.u32 2147483647, %v513_v22  ;;  %vm551_vm12 = vmor %vm549_vm11, %vm550_vm10 }
  0xe1   :  { %v546_v46 = vsub.f32 1.0, %v545_v25  ;;  %v527_v26 = vsel %vm524_vm7, %v526_v3, %v522_v9  ;;  %v537_v62 = vsel %vm536_vm8, %v1655_v57, %v533_v15 }
  0xe2   :  { %v542_v2 = vsel %vm539_vm9, %v541_v60, %v537_v62  ;;  %v561_v11 = vmul.f32 %v1659_v54, %v527_v26  ;;  %vm554_vm13 = vcmp.eq.f32.partialorder %v553_v58, 8.507059e+37 }
  0xe3   :  { %v560_v48 = vmul.f32 0.0, %v542_v2  ;;  %v547_v47 = vmul.f32 %v1657_v61, %v546_v46 }
  0xe5   :  { %v2327_v8 = vadd.f32 %v561_v11, %v560_v48  ;;  %v548_v37 = vadd.f32 %v1657_v61, %v547_v47 }
  0xe7   :  { %1660 = vtanh.f32 %v2327_v8  ;;  %v552_v36 = vsel %vm551_vm12, %v1657_v61, %v548_v37 }
  0xe8   :  { %v557_v57 = vsel %vm554_vm13, %v556_v7, %v552_v36 }
  0xed   :  { %v1661_v6 = vpop.eup %1660 }
  0xee   :  { %v564_v27 = vmul.f32 %v1661_v6, %v557_v57 }
  0xf0   :  { %v565_v42 = vpack.c.bf16 %v564_v27, %v564_v27 }
  0xf2   :  { %574 = vmatmul.bf16.vlgmr.msra.gmra.mxu0 %v565_v42  ;;  %587 = vmatmul.bf16.vlgmr.msra.gmra.mxu1 %v565_v42 }
  0xf3   :  { %600 = vmatmul.bf16.vlgmr.msra.gmra.mxu2 %v565_v42  ;;  %613 = vmatmul.bf16.vlgmr.msra.gmra.mxu3 %v565_v42 }
  0xf4   :  { %806 = vmatpush.bf16.msra.mxu0 %v1846_v12  ;;  %819 = vmatpush.bf16.msra.mxu1 %v1859_v16 }
  0xf5   :  { %832 = vmatpush.bf16.msra.mxu2 %v1861_v17  ;;  %845 = vmatpush.bf16.msra.mxu3 %v1901_v30 }
  0xf8   :  { %807 = vmatpush.bf16.msra.mxu0 %v1882_v23  ;;  %820 = vmatpush.bf16.msra.mxu1 %v1884_v24 }
  0xf9   :  { %833 = vmatpush.bf16.msra.mxu2 %v1899_v29  ;;  %846 = vmatpush.bf16.msra.mxu3 %v1943_v44 }
  0xfc   :  { %808 = vmatpush.bf16.msra.mxu0 %v1930_v39  ;;  %821 = vmatpush.bf16.msra.mxu1 %v1932_v40 }
  0xfd   :  { %834 = vmatpush.bf16.msra.mxu2 %v1941_v43  ;;  %847 = vmatpush.bf16.msra.mxu3 %v1983_v56 }
 0x100   :  { %809 = vmatpush.bf16.msra.mxu0 %v1969_v51  ;;  %822 = vmatpush.bf16.msra.mxu1 %v1971_v52 }
 0x101   :  { %835 = vmatpush.bf16.msra.mxu2 %v1981_v55  ;;  %848 = vmatpush.bf16.msra.mxu3 %v2022_v5 }
 0x104   :  { %810 = vmatpush.bf16.msra.mxu0 %v2008_v0  ;;  %823 = vmatpush.bf16.msra.mxu1 %v2010_v1 }
 0x105   :  { %836 = vmatpush.bf16.msra.mxu2 %v2020_v4  ;;  %849 = vmatpush.bf16.msra.mxu3 %v2062_v20 }
 0x108   :  { %811 = vmatpush.bf16.msra.mxu0 %v2048_v13  ;;  %824 = vmatpush.bf16.msra.mxu1 %v2050_v14 }
 0x109   :  { %837 = vmatpush.bf16.msra.mxu2 %v2060_v19  ;;  %850 = vmatpush.bf16.msra.mxu3 %v2095_v35 }
 0x10c   :  { %812 = vmatpush.bf16.msra.mxu0 %v2087_v32  ;;  %825 = vmatpush.bf16.msra.mxu1 %v2089_v33 }
 0x10d   :  { %838 = vmatpush.bf16.msra.mxu2 %v2093_v34  ;;  %851 = vmatpush.bf16.msra.mxu3 %v2133_v50 }
 0x110   :  { %813 = vmatpush.bf16.msra.mxu0 %v2118_v45  ;;  %826 = vmatpush.bf16.msra.mxu1 %v2131_v49 }
 0x111   :  { %839 = vmatpush.bf16.msra.mxu2 %v2135_v53  ;;  %852 = vmatpush.bf16.msra.mxu3 %v2150_v59 }
 0x16f   :  { %v575_v47 = vpop.f32.mrf.mxu0  ;;  %v588_v48 = vpop.f32.mrf.mxu1 }
 0x170   :  { %v618_v11 = vadd.f32 %v575_v47, %v2249_v18  ;;  %v619_v22 = vadd.f32 %v588_v48, %v2251_v21 }
 0x172   :  { %v1590_v61 = vmul.f32 -1.442695, %v618_v11  ;;  %v1591_v10 = vmul.f32 -1.442695, %v619_v22 }
 0x174   :  { %1662 = vpow2.f32 %v1590_v61 }
 0x175   :  { %1664 = vpow2.f32 %v1591_v10 }
 0x176   :  { %v601_v25 = vpop.f32.mrf.mxu2  ;;  %v614_v3 = vpop.f32.mrf.mxu3 }
 0x177   :  { %v620_v15 = vadd.f32 %v601_v25, %v2258_v28  ;;  %v577_v60 = vpop.f32.mrf.mxu0  ;;  %v590_v9 = vpop.f32.mrf.mxu1  ;;  %v621_v36 = vadd.f32 %v614_v3, %v2261_v31 }
 0x179   :  { %v1592_v54 = vmul.f32 -1.442695, %v620_v15 }
 0x17a   :  { %v1663_v46 = vpop.eup %1662 }
 0x17b   :  { %v1665_v26 = vpop.eup %1664  ;;  %v631_v62 = vadd.f32 1.0, %v1663_v46  ;;  %1666 = vpow2.f32 %v1592_v54 }
 0x17c   :  { %v632_v2 = vadd.f32 1.0, %v1665_v26 }
 0x17d   :  { %1668 = vrcp.f32 %v631_v62  ;;  %v645_v42 = vand.u32 2147483648, %v631_v62  ;;  %v643_v11 = vand.u32 2147483647, %v631_v62  ;;  %vm639_vm0 = vweird.f32 %v631_v62 }
 0x17e   :  { %1670 = vrcp.f32 %v632_v2  ;;  %v603_v18 = vpop.f32.mrf.mxu2  ;;  %v616_v21 = vpop.f32.mrf.mxu3  ;;  %v660_v47 = vand.u32 2147483648, %v632_v2  ;;  %v658_v61 = vand.u32 2147483647, %v632_v2  ;;  %vm654_vm1 = vweird.f32 %v632_v2 }
 0x17f   :  { %v646_v3 = vor.u32 1.1754944e-38, %v645_v42  ;;  %vm644_vm4 = vcmp.eq.f32.partialorder %v643_v11, 8.507059e+37 }
 0x180   :  { %v661_v60 = vor.u32 1.1754944e-38, %v660_v47  ;;  %vm659_vm5 = vcmp.eq.f32.partialorder %v658_v61, 8.507059e+37 }
 0x181   :  { %v1667_v37 = vpop.eup %1666 }
 0x182   :  { %v633_v63 = vadd.f32 1.0, %v1667_v37 }
 0x183   :  { %v1669_v58 = vpop.eup %1668 }
 0x184   :  { %v1671_v7 = vpop.eup %1670  ;;  %v635_v6 = vmul.f32 %v1669_v58, %v631_v62  ;;  %1672 = vrcp.f32 %v633_v63  ;;  %vm640_vm14 = vweird.f32 %v1669_v58  ;;  %vm669_vm7 = vweird.f32 %v633_v63 }
 0x185   :  { %v650_v28 = vmul.f32 %v1671_v7, %v632_v2  ;;  %1674 = vtanh.f32 %v621_v36  ;;  %vm655_vm15 = vweird.f32 %v1671_v7  ;;  %vm641_vm2 = vmor %vm639_vm0, %vm640_vm14 }
 0x186   :  { %v636_v57 = vsub.f32 1.0, %v635_v6  ;;  %vm656_vm3 = vmor %vm654_vm1, %vm655_vm15 }
 0x187   :  { %v651_v27 = vsub.f32 1.0, %v650_v28  ;;  %v675_v28 = vand.u32 2147483648, %v633_v63 }
 0x188   :  { %v637_v48 = vmul.f32 %v1669_v58, %v636_v57 }
 0x189   :  { %v652_v22 = vmul.f32 %v1671_v7, %v651_v27  ;;  %v676_v27 = vor.u32 1.1754944e-38, %v675_v28 }
 0x18a   :  { %v1673_v10 = vpop.eup %1672  ;;  %v638_v25 = vadd.f32 %v1669_v58, %v637_v48 }
 0x18b   :  { %v665_v31 = vmul.f32 %v1673_v10, %v633_v63  ;;  %v653_v15 = vadd.f32 %v1671_v7, %v652_v22  ;;  %v1675_v54 = vpop.eup %1674  ;;  %vm670_vm6 = vweird.f32 %v1673_v10 }
 0x18c   :  { %v642_v9 = vsel %vm641_vm2, %v1669_v58, %v638_v25  ;;  %v673_v58 = vand.u32 2147483647, %v633_v63  ;;  %vm671_vm8 = vmor %vm669_vm7, %vm670_vm6 }
 0x18d   :  { %v666_v46 = vsub.f32 1.0, %v665_v31  ;;  %v647_v26 = vsel %vm644_vm4, %v646_v3, %v642_v9  ;;  %v657_v18 = vsel %vm656_vm3, %v1671_v7, %v653_v15  ;;  %v2581_v3 = vld [vmem:[#allocation3_spill] sm:$0xff] }
 0x18e   :  { %v662_v21 = vsel %vm659_vm5, %v661_v60, %v657_v18  ;;  %v681_v37 = vmul.f32 %v1675_v54, %v647_v26  ;;  %vm674_vm9 = vcmp.eq.f32.partialorder %v673_v58, 8.507059e+37 }
 0x18f   :  { %v680_v36 = vmul.f32 %v662_v21, %v2327_v8  ;;  %v667_v6 = vmul.f32 %v1673_v10, %v666_v46 }
 0x191   :  { %v2367_v62 = vadd.f32 %v681_v37, %v680_v36  ;;  %v668_v2 = vadd.f32 %v1673_v10, %v667_v6 }
 0x193   :  { %1676 = vtanh.f32 %v2367_v62  ;;  %v672_v57 = vsel %vm671_vm8, %v1673_v10, %v668_v2  ;;  %v2582_v2 = vld [vmem:[#allocation4_spill] sm:$0xff] }
 0x194   :  { %v677_v42 = vsel %vm674_vm9, %v676_v27, %v672_v57 }
 0x199   :  { %v1677_v7 = vpop.eup %1676 }
 0x19a   :  { %v684_v47 = vmul.f32 %v1677_v7, %v677_v42 }
 0x19c   :  { %v685_v48 = vpack.c.bf16 %v684_v47, %v684_v47 }
 0x19e   :  { %694 = vmatmul.bf16.vlgmr.msrb.gmra.mxu0 %v685_v48  ;;  %707 = vmatmul.bf16.vlgmr.msrb.gmra.mxu1 %v685_v48 }
 0x19f   :  { %720 = vmatmul.bf16.vlgmr.msrb.gmra.mxu2 %v685_v48  ;;  %733 = vmatmul.bf16.vlgmr.msrb.gmra.mxu3 %v685_v48 }
 0x1a0   :  { %926 = vmatpush.bf16.msrb.mxu0 %v1846_v12  ;;  %939 = vmatpush.bf16.msrb.mxu1 %v1859_v16 }
 0x1a1   :  { %952 = vmatpush.bf16.msrb.mxu2 %v1861_v17  ;;  %965 = vmatpush.bf16.msrb.mxu3 %v1901_v30 }
 0x1a4   :  { %927 = vmatpush.bf16.msrb.mxu0 %v1882_v23  ;;  %940 = vmatpush.bf16.msrb.mxu1 %v1884_v24 }
 0x1a5   :  { %953 = vmatpush.bf16.msrb.mxu2 %v1899_v29  ;;  %966 = vmatpush.bf16.msrb.mxu3 %v1943_v44 }
 0x1a8   :  { %928 = vmatpush.bf16.msrb.mxu0 %v1930_v39  ;;  %941 = vmatpush.bf16.msrb.mxu1 %v1932_v40 }
 0x1a9   :  { %954 = vmatpush.bf16.msrb.mxu2 %v1941_v43  ;;  %967 = vmatpush.bf16.msrb.mxu3 %v1983_v56 }
 0x1ac   :  { %929 = vmatpush.bf16.msrb.mxu0 %v1969_v51  ;;  %942 = vmatpush.bf16.msrb.mxu1 %v1971_v52 }
 0x1ad   :  { %955 = vmatpush.bf16.msrb.mxu2 %v1981_v55  ;;  %968 = vmatpush.bf16.msrb.mxu3 %v2022_v5 }
 0x1b0   :  { %930 = vmatpush.bf16.msrb.mxu0 %v2008_v0  ;;  %943 = vmatpush.bf16.msrb.mxu1 %v2010_v1 }
 0x1b1   :  { %956 = vmatpush.bf16.msrb.mxu2 %v2020_v4  ;;  %969 = vmatpush.bf16.msrb.mxu3 %v2062_v20 }
 0x1b4   :  { %931 = vmatpush.bf16.msrb.mxu0 %v2048_v13  ;;  %944 = vmatpush.bf16.msrb.mxu1 %v2050_v14 }
 0x1b5   :  { %957 = vmatpush.bf16.msrb.mxu2 %v2060_v19  ;;  %970 = vmatpush.bf16.msrb.mxu3 %v2095_v35 }
 0x1b8   :  { %932 = vmatpush.bf16.msrb.mxu0 %v2087_v32  ;;  %945 = vmatpush.bf16.msrb.mxu1 %v2089_v33 }
 0x1b9   :  { %958 = vmatpush.bf16.msrb.mxu2 %v2093_v34  ;;  %971 = vmatpush.bf16.msrb.mxu3 %v2133_v50 }
 0x1bc   :  { %933 = vmatpush.bf16.msrb.mxu0 %v2118_v45  ;;  %946 = vmatpush.bf16.msrb.mxu1 %v2131_v49 }
 0x1bd   :  { %959 = vmatpush.bf16.msrb.mxu2 %v2135_v53  ;;  %972 = vmatpush.bf16.msrb.mxu3 %v2150_v59 }
 0x21b   :  { %v695_v8 = vpop.f32.mrf.mxu0  ;;  %v708_v63 = vpop.f32.mrf.mxu1 }
 0x21c   :  { %v738_v11 = vadd.f32 %v695_v8, %v2263_v38  ;;  %v739_v22 = vadd.f32 %v708_v63, %v2265_v41 }
 0x21e   :  { %v1593_v61 = vmul.f32 -1.442695, %v738_v11  ;;  %v1594_v10 = vmul.f32 -1.442695, %v739_v22 }
 0x220   :  { %1678 = vpow2.f32 %v1593_v61 }
 0x221   :  { %1680 = vpow2.f32 %v1594_v10 }
 0x222   :  { %v721_v25 = vpop.f32.mrf.mxu2  ;;  %v734_v31 = vpop.f32.mrf.mxu3 }
 0x223   :  { %v740_v15 = vadd.f32 %v721_v25, %v2581_v3  ;;  %v697_v60 = vpop.f32.mrf.mxu0  ;;  %v710_v9 = vpop.f32.mrf.mxu1  ;;  %v741_v28 = vadd.f32 %v734_v31, %v2582_v2 }
 0x225   :  { %v1595_v54 = vmul.f32 -1.442695, %v740_v15 }
 0x226   :  { %v1679_v46 = vpop.eup %1678 }
 0x227   :  { %v1681_v26 = vpop.eup %1680  ;;  %v751_v18 = vadd.f32 1.0, %v1679_v46  ;;  %1682 = vpow2.f32 %v1595_v54 }
 0x228   :  { %v752_v21 = vadd.f32 1.0, %v1681_v26 }
 0x229   :  { %1684 = vrcp.f32 %v751_v18  ;;  %v765_v47 = vand.u32 2147483648, %v751_v18  ;;  %v763_v63 = vand.u32 2147483647, %v751_v18  ;;  %vm759_vm12 = vweird.f32 %v751_v18 }
 0x22a   :  { %1686 = vrcp.f32 %v752_v21  ;;  %v723_v38 = vpop.f32.mrf.mxu2  ;;  %v736_v41 = vpop.f32.mrf.mxu3  ;;  %v780_v48 = vand.u32 2147483648, %v752_v21  ;;  %v778_v22 = vand.u32 2147483647, %v752_v21  ;;  %vm774_vm13 = vweird.f32 %v752_v21 }
 0x22b   :  { %v766_v31 = vor.u32 1.1754944e-38, %v765_v47  ;;  %vm764_vm0 = vcmp.eq.f32.partialorder %v763_v63, 8.507059e+37  ;;  %v2584_v63 = vld [vmem:[#allocation6_spill] sm:$0xff] }
 0x22c   :  { %v781_v15 = vor.u32 1.1754944e-38, %v780_v48  ;;  %vm779_vm1 = vcmp.eq.f32.partialorder %v778_v22, 8.507059e+37  ;;  %v2583_v48 = vld [vmem:[#allocation5_spill] sm:$0xff] }
 0x22d   :  { %v1683_v37 = vpop.eup %1682 }
 0x22e   :  { %v753_v36 = vadd.f32 1.0, %v1683_v37 }
 0x22f   :  { %v1685_v6 = vpop.eup %1684 }
 0x230   :  { %v1687_v58 = vpop.eup %1686  ;;  %v755_v57 = vmul.f32 %v1685_v6, %v751_v18  ;;  %1688 = vrcp.f32 %v753_v36  ;;  %vm760_vm10 = vweird.f32 %v1685_v6  ;;  %vm789_vm3 = vweird.f32 %v753_v36 }
 0x231   :  { %v770_v27 = vmul.f32 %v1687_v58, %v752_v21  ;;  %1690 = vtanh.f32 %v741_v28  ;;  %vm775_vm11 = vweird.f32 %v1687_v58  ;;  %vm761_vm14 = vmor %vm759_vm12, %vm760_vm10  ;;  %v795_v28 = vand.u32 2147483648, %v753_v36 }
 0x232   :  { %v756_v7 = vsub.f32 1.0, %v755_v57  ;;  %vm776_vm15 = vmor %vm774_vm13, %vm775_vm11 }
 0x233   :  { %v771_v42 = vsub.f32 1.0, %v770_v27  ;;  %v796_v27 = vor.u32 1.1754944e-38, %v795_v28 }
 0x234   :  { %v757_v8 = vmul.f32 %v1685_v6, %v756_v7 }
 0x235   :  { %v772_v11 = vmul.f32 %v1687_v58, %v771_v42 }
 0x236   :  { %v1689_v61 = vpop.eup %1688  ;;  %v758_v10 = vadd.f32 %v1685_v6, %v757_v8 }
 0x237   :  { %v785_v25 = vmul.f32 %v1689_v61, %v753_v36  ;;  %v773_v3 = vadd.f32 %v1687_v58, %v772_v11  ;;  %v1691_v9 = vpop.eup %1690  ;;  %vm790_vm2 = vweird.f32 %v1689_v61 }
 0x238   :  { %v762_v60 = vsel %vm761_vm14, %v1685_v6, %v758_v10  ;;  %v793_v6 = vand.u32 2147483647, %v753_v36  ;;  %vm791_vm4 = vmor %vm789_vm3, %vm790_vm2 }
 0x239   :  { %v786_v54 = vsub.f32 1.0, %v785_v25  ;;  %v767_v46 = vsel %vm764_vm0, %v766_v31, %v762_v60  ;;  %v777_v26 = vsel %vm776_vm15, %v1687_v58, %v773_v3  ;;  %v2585_v31 = vld [vmem:[#allocation7_spill] sm:$0xff] }
 0x23a   :  { %v782_v38 = vsel %vm779_vm1, %v781_v15, %v777_v26  ;;  %v801_v41 = vmul.f32 %v1691_v9, %v767_v46  ;;  %vm794_vm5 = vcmp.eq.f32.partialorder %v793_v6, 8.507059e+37  ;;  %v2586_v6 = vld [vmem:[#allocation8_spill] sm:$0xff] }
 0x23b   :  { %v800_v37 = vmul.f32 %v782_v38, %v2367_v62  ;;  %v787_v2 = vmul.f32 %v1689_v61, %v786_v54 }
 0x23d   :  { %v2407_v18 = vadd.f32 %v801_v41, %v800_v37  ;;  %v788_v21 = vadd.f32 %v1689_v61, %v787_v2 }
 0x23f   :  { %1692 = vtanh.f32 %v2407_v18  ;;  %v792_v57 = vsel %vm791_vm4, %v1689_v61, %v788_v21 }
 0x240   :  { %v797_v7 = vsel %vm794_vm5, %v796_v27, %v792_v57 }
 0x245   :  { %v1693_v58 = vpop.eup %1692 }
 0x246   :  { %v804_v42 = vmul.f32 %v1693_v58, %v797_v7 }
 0x248   :  { %v805_v47 = vpack.c.bf16 %v804_v42, %v804_v42 }
 0x24a   :  { %814 = vmatmul.bf16.vlgmr.msra.gmra.mxu0 %v805_v47  ;;  %827 = vmatmul.bf16.vlgmr.msra.gmra.mxu1 %v805_v47 }
 0x24b   :  { %840 = vmatmul.bf16.vlgmr.msra.gmra.mxu2 %v805_v47  ;;  %853 = vmatmul.bf16.vlgmr.msra.gmra.mxu3 %v805_v47 }
 0x24c   :  { %1046 = vmatpush.bf16.msra.mxu0 %v1846_v12  ;;  %1059 = vmatpush.bf16.msra.mxu1 %v1859_v16 }
 0x24d   :  { %1072 = vmatpush.bf16.msra.mxu2 %v1861_v17  ;;  %1085 = vmatpush.bf16.msra.mxu3 %v1901_v30 }
 0x250   :  { %1047 = vmatpush.bf16.msra.mxu0 %v1882_v23  ;;  %1060 = vmatpush.bf16.msra.mxu1 %v1884_v24 }
 0x251   :  { %1073 = vmatpush.bf16.msra.mxu2 %v1899_v29  ;;  %1086 = vmatpush.bf16.msra.mxu3 %v1943_v44 }
 0x254   :  { %1048 = vmatpush.bf16.msra.mxu0 %v1930_v39  ;;  %1061 = vmatpush.bf16.msra.mxu1 %v1932_v40 }
 0x255   :  { %1074 = vmatpush.bf16.msra.mxu2 %v1941_v43  ;;  %1087 = vmatpush.bf16.msra.mxu3 %v1983_v56 }
 0x258   :  { %1049 = vmatpush.bf16.msra.mxu0 %v1969_v51  ;;  %1062 = vmatpush.bf16.msra.mxu1 %v1971_v52 }
 0x259   :  { %1075 = vmatpush.bf16.msra.mxu2 %v1981_v55  ;;  %1088 = vmatpush.bf16.msra.mxu3 %v2022_v5 }
 0x25c   :  { %1050 = vmatpush.bf16.msra.mxu0 %v2008_v0  ;;  %1063 = vmatpush.bf16.msra.mxu1 %v2010_v1 }
 0x25d   :  { %1076 = vmatpush.bf16.msra.mxu2 %v2020_v4  ;;  %1089 = vmatpush.bf16.msra.mxu3 %v2062_v20 }
 0x260   :  { %1051 = vmatpush.bf16.msra.mxu0 %v2048_v13  ;;  %1064 = vmatpush.bf16.msra.mxu1 %v2050_v14 }
 0x261   :  { %1077 = vmatpush.bf16.msra.mxu2 %v2060_v19  ;;  %1090 = vmatpush.bf16.msra.mxu3 %v2095_v35 }
 0x264   :  { %1052 = vmatpush.bf16.msra.mxu0 %v2087_v32  ;;  %1065 = vmatpush.bf16.msra.mxu1 %v2089_v33 }
 0x265   :  { %1078 = vmatpush.bf16.msra.mxu2 %v2093_v34  ;;  %1091 = vmatpush.bf16.msra.mxu3 %v2133_v50 }
 0x268   :  { %1053 = vmatpush.bf16.msra.mxu0 %v2118_v45  ;;  %1066 = vmatpush.bf16.msra.mxu1 %v2131_v49 }
 0x269   :  { %1079 = vmatpush.bf16.msra.mxu2 %v2135_v53  ;;  %1092 = vmatpush.bf16.msra.mxu3 %v2150_v59 }
 0x2c7   :  { %v815_v62 = vpop.f32.mrf.mxu0  ;;  %v828_v36 = vpop.f32.mrf.mxu1 }
 0x2c8   :  { %v858_v8 = vadd.f32 %v815_v62, %v2583_v48  ;;  %v859_v11 = vadd.f32 %v828_v36, %v2584_v63 }
 0x2ca   :  { %v1596_v22 = vmul.f32 -1.442695, %v858_v8  ;;  %v1597_v61 = vmul.f32 -1.442695, %v859_v11 }
 0x2cc   :  { %1694 = vpow2.f32 %v1596_v22 }
 0x2cd   :  { %1696 = vpow2.f32 %v1597_v61 }
 0x2ce   :  { %v841_v10 = vpop.f32.mrf.mxu2  ;;  %v854_v25 = vpop.f32.mrf.mxu3 }
 0x2cf   :  { %v860_v3 = vadd.f32 %v841_v10, %v2585_v31  ;;  %v817_v15 = vpop.f32.mrf.mxu0  ;;  %v830_v60 = vpop.f32.mrf.mxu1  ;;  %v861_v57 = vadd.f32 %v854_v25, %v2586_v6 }
 0x2d1   :  { %v1598_v9 = vmul.f32 -1.442695, %v860_v3 }
 0x2d2   :  { %v1695_v54 = vpop.eup %1694 }
 0x2d3   :  { %v1697_v46 = vpop.eup %1696  ;;  %v871_v26 = vadd.f32 1.0, %v1695_v54  ;;  %1698 = vpow2.f32 %v1598_v9 }
 0x2d4   :  { %v872_v38 = vadd.f32 1.0, %v1697_v46 }
 0x2d5   :  { %1700 = vrcp.f32 %v871_v26  ;;  %v885_v62 = vand.u32 2147483648, %v871_v26  ;;  %v883_v8 = vand.u32 2147483647, %v871_v26  ;;  %vm879_vm8 = vweird.f32 %v871_v26 }
 0x2d6   :  { %1702 = vrcp.f32 %v872_v38  ;;  %v843_v41 = vpop.f32.mrf.mxu2  ;;  %v856_v37 = vpop.f32.mrf.mxu3  ;;  %v900_v36 = vand.u32 2147483648, %v872_v38  ;;  %v898_v11 = vand.u32 2147483647, %v872_v38  ;;  %vm894_vm9 = vweird.f32 %v872_v38 }
 0x2d7   :  { %v886_v25 = vor.u32 1.1754944e-38, %v885_v62  ;;  %vm884_vm12 = vcmp.eq.f32.partialorder %v883_v8, 8.507059e+37  ;;  %v2588_v8 = vld [vmem:[#allocation10_spill] sm:$0xff] }
 0x2d8   :  { %v901_v3 = vor.u32 1.1754944e-38, %v900_v36  ;;  %vm899_vm13 = vcmp.eq.f32.partialorder %v898_v11, 8.507059e+37  ;;  %v2587_v36 = vld [vmem:[#allocation9_spill] sm:$0xff] }
 0x2d9   :  { %v1699_v2 = vpop.eup %1698 }
 0x2da   :  { %v873_v21 = vadd.f32 1.0, %v1699_v2 }
 0x2db   :  { %v1701_v28 = vpop.eup %1700 }
 0x2dc   :  { %v1703_v27 = vpop.eup %1702  ;;  %v875_v58 = vmul.f32 %v1701_v28, %v871_v26  ;;  %1704 = vrcp.f32 %v873_v21  ;;  %vm880_vm6 = vweird.f32 %v1701_v28  ;;  %vm909_vm15 = vweird.f32 %v873_v21 }
 0x2dd   :  { %v890_v7 = vmul.f32 %v1703_v27, %v872_v38  ;;  %1706 = vtanh.f32 %v861_v57  ;;  %vm895_vm7 = vweird.f32 %v1703_v27  ;;  %vm881_vm10 = vmor %vm879_vm8, %vm880_vm6  ;;  %v915_v57 = vand.u32 2147483648, %v873_v21 }
 0x2de   :  { %v876_v42 = vsub.f32 1.0, %v875_v58  ;;  %vm896_vm11 = vmor %vm894_vm9, %vm895_vm7 }
 0x2df   :  { %v891_v47 = vsub.f32 1.0, %v890_v7  ;;  %v916_v7 = vor.u32 1.1754944e-38, %v915_v57 }
 0x2e0   :  { %v877_v48 = vmul.f32 %v1701_v28, %v876_v42 }
 0x2e1   :  { %v892_v63 = vmul.f32 %v1703_v27, %v891_v47 }
 0x2e2   :  { %v1705_v22 = vpop.eup %1704  ;;  %v878_v61 = vadd.f32 %v1701_v28, %v877_v48 }
 0x2e3   :  { %v905_v10 = vmul.f32 %v1705_v22, %v873_v21  ;;  %v893_v31 = vadd.f32 %v1703_v27, %v892_v63  ;;  %v1707_v60 = vpop.eup %1706  ;;  %vm910_vm14 = vweird.f32 %v1705_v22 }
 0x2e4   :  { %v882_v15 = vsel %vm881_vm10, %v1701_v28, %v878_v61  ;;  %v913_v28 = vand.u32 2147483647, %v873_v21  ;;  %vm911_vm0 = vmor %vm909_vm15, %vm910_vm14 }
 0x2e5   :  { %v906_v9 = vsub.f32 1.0, %v905_v10  ;;  %v887_v54 = vsel %vm884_vm12, %v886_v25, %v882_v15  ;;  %v897_v46 = vsel %vm896_vm11, %v1703_v27, %v893_v31  ;;  %v2589_v25 = vld [vmem:[#allocation11_spill] sm:$0xff] }
 0x2e6   :  { %v902_v41 = vsel %vm899_vm13, %v901_v3, %v897_v46  ;;  %v921_v37 = vmul.f32 %v1707_v60, %v887_v54  ;;  %vm914_vm1 = vcmp.eq.f32.partialorder %v913_v28, 8.507059e+37  ;;  %v2590_v28 = vld [vmem:[#allocation12_spill] sm:$0xff] }
 0x2e7   :  { %v920_v2 = vmul.f32 %v902_v41, %v2407_v18  ;;  %v907_v6 = vmul.f32 %v1705_v22, %v906_v9 }
 0x2e9   :  { %v2447_v26 = vadd.f32 %v921_v37, %v920_v2  ;;  %v908_v38 = vadd.f32 %v1705_v22, %v907_v6 }
 0x2eb   :  { %1708 = vtanh.f32 %v2447_v26  ;;  %v912_v58 = vsel %vm911_vm0, %v1705_v22, %v908_v38 }
 0x2ec   :  { %v917_v42 = vsel %vm914_vm1, %v916_v7, %v912_v58 }
 0x2f1   :  { %v1709_v27 = vpop.eup %1708 }
 0x2f2   :  { %v924_v47 = vmul.f32 %v1709_v27, %v917_v42 }
 0x2f4   :  { %v925_v62 = vpack.c.bf16 %v924_v47, %v924_v47 }
 0x2f6   :  { %934 = vmatmul.bf16.vlgmr.msrb.gmra.mxu0 %v925_v62  ;;  %947 = vmatmul.bf16.vlgmr.msrb.gmra.mxu1 %v925_v62 }
 0x2f7   :  { %960 = vmatmul.bf16.vlgmr.msrb.gmra.mxu2 %v925_v62  ;;  %973 = vmatmul.bf16.vlgmr.msrb.gmra.mxu3 %v925_v62 }
 0x2f8   :  { %1166 = vmatpush.bf16.msrb.mxu0 %v1846_v12  ;;  %1179 = vmatpush.bf16.msrb.mxu1 %v1859_v16 }
 0x2f9   :  { %1192 = vmatpush.bf16.msrb.mxu2 %v1861_v17  ;;  %1205 = vmatpush.bf16.msrb.mxu3 %v1901_v30 }
 0x2fc   :  { %1167 = vmatpush.bf16.msrb.mxu0 %v1882_v23  ;;  %1180 = vmatpush.bf16.msrb.mxu1 %v1884_v24 }
 0x2fd   :  { %1193 = vmatpush.bf16.msrb.mxu2 %v1899_v29  ;;  %1206 = vmatpush.bf16.msrb.mxu3 %v1943_v44 }
 0x300   :  { %1168 = vmatpush.bf16.msrb.mxu0 %v1930_v39  ;;  %1181 = vmatpush.bf16.msrb.mxu1 %v1932_v40 }
 0x301   :  { %1194 = vmatpush.bf16.msrb.mxu2 %v1941_v43  ;;  %1207 = vmatpush.bf16.msrb.mxu3 %v1983_v56 }
 0x304   :  { %1169 = vmatpush.bf16.msrb.mxu0 %v1969_v51  ;;  %1182 = vmatpush.bf16.msrb.mxu1 %v1971_v52 }
 0x305   :  { %1195 = vmatpush.bf16.msrb.mxu2 %v1981_v55  ;;  %1208 = vmatpush.bf16.msrb.mxu3 %v2022_v5 }
 0x308   :  { %1170 = vmatpush.bf16.msrb.mxu0 %v2008_v0  ;;  %1183 = vmatpush.bf16.msrb.mxu1 %v2010_v1 }
 0x309   :  { %1196 = vmatpush.bf16.msrb.mxu2 %v2020_v4  ;;  %1209 = vmatpush.bf16.msrb.mxu3 %v2062_v20 }
 0x30c   :  { %1171 = vmatpush.bf16.msrb.mxu0 %v2048_v13  ;;  %1184 = vmatpush.bf16.msrb.mxu1 %v2050_v14 }
 0x30d   :  { %1197 = vmatpush.bf16.msrb.mxu2 %v2060_v19  ;;  %1210 = vmatpush.bf16.msrb.mxu3 %v2095_v35 }
 0x310   :  { %1172 = vmatpush.bf16.msrb.mxu0 %v2087_v32  ;;  %1185 = vmatpush.bf16.msrb.mxu1 %v2089_v33 }
 0x311   :  { %1198 = vmatpush.bf16.msrb.mxu2 %v2093_v34  ;;  %1211 = vmatpush.bf16.msrb.mxu3 %v2133_v50 }
 0x314   :  { %1173 = vmatpush.bf16.msrb.mxu0 %v2118_v45  ;;  %1186 = vmatpush.bf16.msrb.mxu1 %v2131_v49 }
 0x315   :  { %1199 = vmatpush.bf16.msrb.mxu2 %v2135_v53  ;;  %1212 = vmatpush.bf16.msrb.mxu3 %v2150_v59 }
 0x373   :  { %v935_v18 = vpop.f32.mrf.mxu0  ;;  %v948_v21 = vpop.f32.mrf.mxu1 }
 0x374   :  { %v978_v48 = vadd.f32 %v935_v18, %v2587_v36  ;;  %v979_v63 = vadd.f32 %v948_v21, %v2588_v8 }
 0x376   :  { %v1599_v11 = vmul.f32 -1.442695, %v978_v48  ;;  %v1600_v22 = vmul.f32 -1.442695, %v979_v63 }
 0x378   :  { %1710 = vpow2.f32 %v1599_v11 }
 0x379   :  { %1712 = vpow2.f32 %v1600_v22 }
 0x37a   :  { %v961_v61 = vpop.f32.mrf.mxu2  ;;  %v974_v10 = vpop.f32.mrf.mxu3 }
 0x37b   :  { %v980_v31 = vadd.f32 %v961_v61, %v2589_v25  ;;  %v937_v3 = vpop.f32.mrf.mxu0  ;;  %v950_v15 = vpop.f32.mrf.mxu1  ;;  %v981_v58 = vadd.f32 %v974_v10, %v2590_v28 }
 0x37d   :  { %v1601_v60 = vmul.f32 -1.442695, %v980_v31 }
 0x37e   :  { %v1711_v9 = vpop.eup %1710 }
 0x37f   :  { %v1713_v54 = vpop.eup %1712  ;;  %v991_v46 = vadd.f32 1.0, %v1711_v9  ;;  %1714 = vpow2.f32 %v1601_v60 }
 0x380   :  { %v992_v41 = vadd.f32 1.0, %v1713_v54 }
 0x381   :  { %1716 = vrcp.f32 %v991_v46  ;;  %v1005_v18 = vand.u32 2147483648, %v991_v46  ;;  %v1003_v48 = vand.u32 2147483647, %v991_v46  ;;  %vm999_vm4 = vweird.f32 %v991_v46 }
 0x382   :  { %1718 = vrcp.f32 %v992_v41  ;;  %v963_v37 = vpop.f32.mrf.mxu2  ;;  %v976_v2 = vpop.f32.mrf.mxu3  ;;  %v1020_v21 = vand.u32 2147483648, %v992_v41  ;;  %v1018_v63 = vand.u32 2147483647, %v992_v41  ;;  %vm1014_vm5 = vweird.f32 %v992_v41 }
 0x383   :  { %v1006_v10 = vor.u32 1.1754944e-38, %v1005_v18  ;;  %vm1004_vm8 = vcmp.eq.f32.partialorder %v1003_v48, 8.507059e+37 }
 0x384   :  { %v1021_v31 = vor.u32 1.1754944e-38, %v1020_v21  ;;  %vm1019_vm9 = vcmp.eq.f32.partialorder %v1018_v63, 8.507059e+37 }
 0x385   :  { %v1715_v6 = vpop.eup %1714 }
 0x386   :  { %v993_v38 = vadd.f32 1.0, %v1715_v6 }
 0x387   :  { %v1717_v57 = vpop.eup %1716 }
 0x388   :  { %v1719_v7 = vpop.eup %1718  ;;  %v995_v27 = vmul.f32 %v1717_v57, %v991_v46  ;;  %1720 = vrcp.f32 %v993_v38  ;;  %vm1000_vm2 = vweird.f32 %v1717_v57  ;;  %vm1029_vm11 = vweird.f32 %v993_v38 }
 0x389   :  { %v1010_v42 = vmul.f32 %v1719_v7, %v992_v41  ;;  %1722 = vtanh.f32 %v981_v58  ;;  %vm1015_vm3 = vweird.f32 %v1719_v7  ;;  %vm1001_vm6 = vmor %vm999_vm4, %vm1000_vm2  ;;  %v1035_v58 = vand.u32 2147483648, %v993_v38 }
 0x38a   :  { %v996_v47 = vsub.f32 1.0, %v995_v27  ;;  %vm1016_vm7 = vmor %vm1014_vm5, %vm1015_vm3 }
 0x38b   :  { %v1011_v62 = vsub.f32 1.0, %v1010_v42  ;;  %v1036_v42 = vor.u32 1.1754944e-38, %v1035_v58 }
 0x38c   :  { %v997_v36 = vmul.f32 %v1717_v57, %v996_v47 }
 0x38d   :  { %v1012_v8 = vmul.f32 %v1719_v7, %v1011_v62 }
 0x38e   :  { %v1721_v11 = vpop.eup %1720  ;;  %v998_v22 = vadd.f32 %v1717_v57, %v997_v36 }
 0x38f   :  { %v1025_v61 = vmul.f32 %v1721_v11, %v993_v38  ;;  %v1013_v25 = vadd.f32 %v1719_v7, %v1012_v8  ;;  %v1723_v15 = vpop.eup %1722  ;;  %vm1030_vm10 = vweird.f32 %v1721_v11 }
 0x390   :  { %v1002_v3 = vsel %vm1001_vm6, %v1717_v57, %v998_v22  ;;  %v1033_v57 = vand.u32 2147483647, %v993_v38  ;;  %vm1031_vm12 = vmor %vm1029_vm11, %vm1030_vm10 }
 0x391   :  { %v1026_v60 = vsub.f32 1.0, %v1025_v61  ;;  %v1007_v9 = vsel %vm1004_vm8, %v1006_v10, %v1002_v3  ;;  %v1017_v54 = vsel %vm1016_vm7, %v1719_v7, %v1013_v25 }
 0x392   :  { %v1022_v37 = vsel %vm1019_vm9, %v1021_v31, %v1017_v54  ;;  %v1041_v2 = vmul.f32 %v1723_v15, %v1007_v9  ;;  %vm1034_vm13 = vcmp.eq.f32.partialorder %v1033_v57, 8.507059e+37 }
 0x393   :  { %v1040_v6 = vmul.f32 %v1022_v37, %v2447_v26  ;;  %v1027_v28 = vmul.f32 %v1721_v11, %v1026_v60 }
 0x395   :  { %v2487_v46 = vadd.f32 %v1041_v2, %v1040_v6  ;;  %v1028_v41 = vadd.f32 %v1721_v11, %v1027_v28 }
 0x397   :  { %1724 = vtanh.f32 %v2487_v46  ;;  %v1032_v27 = vsel %vm1031_vm12, %v1721_v11, %v1028_v41 }
 0x398   :  { %v1037_v47 = vsel %vm1034_vm13, %v1036_v42, %v1032_v27 }
 0x39d   :  { %v1725_v7 = vpop.eup %1724 }
 0x39e   :  { %v1044_v62 = vmul.f32 %v1725_v7, %v1037_v47 }
 0x3a0   :  { %v1045_v18 = vpack.c.bf16 %v1044_v62, %v1044_v62 }
 0x3a2   :  { %1054 = vmatmul.bf16.vlgmr.msra.gmra.mxu0 %v1045_v18  ;;  %1067 = vmatmul.bf16.vlgmr.msra.gmra.mxu1 %v1045_v18 }
 0x3a3   :  { %1080 = vmatmul.bf16.vlgmr.msra.gmra.mxu2 %v1045_v18  ;;  %1093 = vmatmul.bf16.vlgmr.msra.gmra.mxu3 %v1045_v18 }
 0x3a4   :  { %1286 = vmatpush.bf16.msra.mxu0 %v1846_v12  ;;  %1299 = vmatpush.bf16.msra.mxu1 %v1859_v16 }
 0x3a5   :  { %1312 = vmatpush.bf16.msra.mxu2 %v1861_v17  ;;  %1325 = vmatpush.bf16.msra.mxu3 %v1901_v30  ;;  %v2591_v17 = vld [vmem:[#allocation13_spill] sm:$0xff] }
 0x3a8   :  { %1287 = vmatpush.bf16.msra.mxu0 %v1882_v23  ;;  %1300 = vmatpush.bf16.msra.mxu1 %v1884_v24  ;;  %v2592_v24 = vld [vmem:[#allocation14_spill] sm:$0xff] }
 0x3a9   :  { %1313 = vmatpush.bf16.msra.mxu2 %v1899_v29  ;;  %1326 = vmatpush.bf16.msra.mxu3 %v1943_v44  ;;  %v2593_v44 = vld [vmem:[#allocation15_spill] sm:$0xff] }
 0x3ac   :  { %1288 = vmatpush.bf16.msra.mxu0 %v1930_v39  ;;  %1301 = vmatpush.bf16.msra.mxu1 %v1932_v40 }
 0x3ad   :  { %1314 = vmatpush.bf16.msra.mxu2 %v1941_v43  ;;  %1327 = vmatpush.bf16.msra.mxu3 %v1983_v56 }
 0x3b0   :  { %1289 = vmatpush.bf16.msra.mxu0 %v1969_v51  ;;  %1302 = vmatpush.bf16.msra.mxu1 %v1971_v52 }
 0x3b1   :  { %1315 = vmatpush.bf16.msra.mxu2 %v1981_v55  ;;  %1328 = vmatpush.bf16.msra.mxu3 %v2022_v5 }
 0x3b4   :  { %1290 = vmatpush.bf16.msra.mxu0 %v2008_v0  ;;  %1303 = vmatpush.bf16.msra.mxu1 %v2010_v1 }
 0x3b5   :  { %1316 = vmatpush.bf16.msra.mxu2 %v2020_v4  ;;  %1329 = vmatpush.bf16.msra.mxu3 %v2062_v20 }
 0x3b8   :  { %1291 = vmatpush.bf16.msra.mxu0 %v2048_v13  ;;  %1304 = vmatpush.bf16.msra.mxu1 %v2050_v14 }
 0x3b9   :  { %1317 = vmatpush.bf16.msra.mxu2 %v2060_v19  ;;  %1330 = vmatpush.bf16.msra.mxu3 %v2095_v35 }
 0x3bc   :  { %1292 = vmatpush.bf16.msra.mxu0 %v2087_v32  ;;  %1305 = vmatpush.bf16.msra.mxu1 %v2089_v33  ;;  %v2594_v33 = vld [vmem:[#allocation16_spill] sm:$0xff] }
 0x3bd   :  { %1318 = vmatpush.bf16.msra.mxu2 %v2093_v34  ;;  %1331 = vmatpush.bf16.msra.mxu3 %v2133_v50 }
 0x3c0   :  { %1293 = vmatpush.bf16.msra.mxu0 %v2118_v45  ;;  %1306 = vmatpush.bf16.msra.mxu1 %v2131_v49 }
 0x3c1   :  { %1319 = vmatpush.bf16.msra.mxu2 %v2135_v53  ;;  %1332 = vmatpush.bf16.msra.mxu3 %v2150_v59 }
 0x41f   :  { %v1055_v12 = vpop.f32.mrf.mxu0  ;;  %v1068_v16 = vpop.f32.mrf.mxu1 }
 0x420   :  { %v1098_v23 = vadd.f32 %v1055_v12, %v2591_v17  ;;  %v1099_v29 = vadd.f32 %v1068_v16, %v2592_v24  ;;  %v2595_v12 = vld [vmem:[#allocation17_spill] sm:$0xff]  ;;  %v2596_v17 = vld [vmem:[#allocation18_spill] sm:$0xff] }
 0x422   :  { %v1602_v30 = vmul.f32 -1.442695, %v1098_v23  ;;  %v1603_v39 = vmul.f32 -1.442695, %v1099_v29 }
 0x424   :  { %1726 = vpow2.f32 %v1602_v30 }
 0x425   :  { %1728 = vpow2.f32 %v1603_v39 }
 0x426   :  { %v1081_v40 = vpop.f32.mrf.mxu2  ;;  %v1094_v43 = vpop.f32.mrf.mxu3 }
 0x427   :  { %v1100_v51 = vadd.f32 %v1081_v40, %v2593_v44  ;;  %v1057_v52 = vpop.f32.mrf.mxu0  ;;  %v1070_v55 = vpop.f32.mrf.mxu1  ;;  %v1101_v34 = vadd.f32 %v1094_v43, %v2594_v33  ;;  %v2597_v40 = vld [vmem:[#allocation19_spill] sm:$0xff] }
 0x429   :  { %v1604_v56 = vmul.f32 -1.442695, %v1100_v51 }
 0x42a   :  { %v1727_v0 = vpop.eup %1726 }
 0x42b   :  { %v1729_v1 = vpop.eup %1728  ;;  %v1111_v4 = vadd.f32 1.0, %v1727_v0  ;;  %1730 = vpow2.f32 %v1604_v56 }
 0x42c   :  { %v1112_v5 = vadd.f32 1.0, %v1729_v1 }
 0x42d   :  { %1732 = vrcp.f32 %v1111_v4  ;;  %v1125_v59 = vand.u32 2147483648, %v1111_v4  ;;  %v1123_v21 = vand.u32 2147483647, %v1111_v4  ;;  %vm1119_vm0 = vweird.f32 %v1111_v4 }
 0x42e   :  { %1734 = vrcp.f32 %v1112_v5  ;;  %v1083_v13 = vpop.f32.mrf.mxu2  ;;  %v1096_v14 = vpop.f32.mrf.mxu3  ;;  %v1140_v26 = vand.u32 2147483648, %v1112_v5  ;;  %v1138_v48 = vand.u32 2147483647, %v1112_v5  ;;  %vm1134_vm1 = vweird.f32 %v1112_v5 }
 0x42f   :  { %v1126_v22 = vor.u32 1.1754944e-38, %v1125_v59  ;;  %vm1124_vm4 = vcmp.eq.f32.partialorder %v1123_v21, 8.507059e+37 }
 0x430   :  { %v1141_v10 = vor.u32 1.1754944e-38, %v1140_v26  ;;  %vm1139_vm5 = vcmp.eq.f32.partialorder %v1138_v48, 8.507059e+37 }
 0x431   :  { %v1731_v19 = vpop.eup %1730 }
 0x432   :  { %v1113_v20 = vadd.f32 1.0, %v1731_v19 }
 0x433   :  { %v1733_v32 = vpop.eup %1732 }
 0x434   :  { %v1735_v35 = vpop.eup %1734  ;;  %v1115_v45 = vmul.f32 %v1733_v32, %v1111_v4  ;;  %1736 = vrcp.f32 %v1113_v20  ;;  %vm1120_vm14 = vweird.f32 %v1733_v32  ;;  %v1155_v41 = vand.u32 2147483648, %v1113_v20 }
 0x435   :  { %v1130_v49 = vmul.f32 %v1735_v35, %v1112_v5  ;;  %1738 = vtanh.f32 %v1101_v34  ;;  %vm1135_vm15 = vweird.f32 %v1735_v35  ;;  %vm1121_vm2 = vmor %vm1119_vm0, %vm1120_vm14  ;;  %vm1149_vm7 = vweird.f32 %v1113_v20 }
 0x436   :  { %v1116_v50 = vsub.f32 1.0, %v1115_v45  ;;  %vm1136_vm3 = vmor %vm1134_vm1, %vm1135_vm15  ;;  %v1153_v58 = vand.u32 2147483647, %v1113_v20  ;;  %v1156_v27 = vor.u32 1.1754944e-38, %v1155_v41 }
 0x437   :  { %v1131_v53 = vsub.f32 1.0, %v1130_v49 }
 0x438   :  { %v1117_v38 = vmul.f32 %v1733_v32, %v1116_v50  ;;  %vm1154_vm9 = vcmp.eq.f32.partialorder %v1153_v58, 8.507059e+37 }
 0x439   :  { %v1132_v36 = vmul.f32 %v1735_v35, %v1131_v53 }
 0x43a   :  { %v1737_v8 = vpop.eup %1736  ;;  %v1118_v63 = vadd.f32 %v1733_v32, %v1117_v38 }
 0x43b   :  { %v1145_v11 = vmul.f32 %v1737_v8, %v1113_v20  ;;  %v1133_v61 = vadd.f32 %v1735_v35, %v1132_v36  ;;  %v1739_v31 = vpop.eup %1738  ;;  %vm1150_vm6 = vweird.f32 %v1737_v8  ;;  %v2598_v20 = vld [vmem:[#allocation20_spill] sm:$0xff] }
 0x43c   :  { %v1122_v25 = vsel %vm1121_vm2, %v1733_v32, %v1118_v63  ;;  %vm1151_vm8 = vmor %vm1149_vm7, %vm1150_vm6 }
 0x43d   :  { %v1146_v3 = vsub.f32 1.0, %v1145_v11  ;;  %v1127_v15 = vsel %vm1124_vm4, %v1126_v22, %v1122_v25  ;;  %v1137_v60 = vsel %vm1136_vm3, %v1735_v35, %v1133_v61 }
 0x43e   :  { %v1142_v9 = vsel %vm1139_vm5, %v1141_v10, %v1137_v60  ;;  %v1161_v54 = vmul.f32 %v1739_v31, %v1127_v15 }
 0x43f   :  { %v1160_v37 = vmul.f32 %v1142_v9, %v2487_v46  ;;  %v1147_v2 = vmul.f32 %v1737_v8, %v1146_v3 }
 0x441   :  { %v2527_v6 = vadd.f32 %v1161_v54, %v1160_v37  ;;  %v1148_v28 = vadd.f32 %v1737_v8, %v1147_v2 }
 0x443   :  { %1740 = vtanh.f32 %v2527_v6  ;;  %v1152_v57 = vsel %vm1151_vm8, %v1737_v8, %v1148_v28 }
 0x444   :  { %v1157_v7 = vsel %vm1154_vm9, %v1156_v27, %v1152_v57 }
 0x449   :  { %v1741_v42 = vpop.eup %1740 }
 0x44a   :  { %v1164_v47 = vmul.f32 %v1741_v42, %v1157_v7 }
 0x44c   :  { %v1165_v62 = vpack.c.bf16 %v1164_v47, %v1164_v47 }
 0x44e   :  { %1174 = vmatmul.bf16.vlgmr.msrb.gmra.mxu0 %v1165_v62  ;;  %1187 = vmatmul.bf16.vlgmr.msrb.gmra.mxu1 %v1165_v62 }
 0x44f   :  { %1200 = vmatmul.bf16.vlgmr.msrb.gmra.mxu2 %v1165_v62  ;;  %1213 = vmatmul.bf16.vlgmr.msrb.gmra.mxu3 %v1165_v62 }
 0x4cb   :  { %v1175_v46 = vpop.f32.mrf.mxu0  ;;  %v1188_v18 = vpop.f32.mrf.mxu1 }
 0x4cc   :  { %v1218_v16 = vadd.f32 %v1175_v46, %v2595_v12  ;;  %v1219_v23 = vadd.f32 %v1188_v18, %v2596_v17  ;;  %v2599_v46 = vld [vmem:[#allocation21_spill] sm:$0xff]  ;;  %v2600_v12 = vld [vmem:[#allocation22_spill] sm:$0xff] }
 0x4ce   :  { %v1605_v24 = vmul.f32 -1.442695, %v1218_v16  ;;  %v1606_v29 = vmul.f32 -1.442695, %v1219_v23 }
 0x4d0   :  { %1742 = vpow2.f32 %v1605_v24 }
 0x4d1   :  { %1744 = vpow2.f32 %v1606_v29 }
 0x4d2   :  { %v1201_v30 = vpop.f32.mrf.mxu2  ;;  %v1214_v39 = vpop.f32.mrf.mxu3 }
 0x4d3   :  { %v1220_v43 = vadd.f32 %v1201_v30, %v2597_v40  ;;  %v1177_v44 = vpop.f32.mrf.mxu0  ;;  %v1190_v51 = vpop.f32.mrf.mxu1  ;;  %v1221_v32 = vadd.f32 %v1214_v39, %v2598_v20  ;;  %v2601_v30 = vld [vmem:[#allocation23_spill] sm:$0xff] }
 0x4d5   :  { %v1607_v52 = vmul.f32 -1.442695, %v1220_v43 }
 0x4d6   :  { %v1743_v55 = vpop.eup %1742 }
 0x4d7   :  { %v1745_v56 = vpop.eup %1744  ;;  %v1231_v0 = vadd.f32 1.0, %v1743_v55  ;;  %1746 = vpow2.f32 %v1607_v52 }
 0x4d8   :  { %v1232_v1 = vadd.f32 1.0, %v1745_v56 }
 0x4d9   :  { %1748 = vrcp.f32 %v1231_v0  ;;  %v1245_v50 = vand.u32 2147483648, %v1231_v0  ;;  %v1243_v26 = vand.u32 2147483647, %v1231_v0  ;;  %vm1239_vm12 = vweird.f32 %v1231_v0 }
 0x4da   :  { %1750 = vrcp.f32 %v1232_v1  ;;  %v1203_v4 = vpop.f32.mrf.mxu2  ;;  %v1216_v5 = vpop.f32.mrf.mxu3  ;;  %v1260_v53 = vand.u32 2147483648, %v1232_v1  ;;  %v1258_v21 = vand.u32 2147483647, %v1232_v1  ;;  %vm1254_vm13 = vweird.f32 %v1232_v1 }
 0x4db   :  { %v1246_v63 = vor.u32 1.1754944e-38, %v1245_v50  ;;  %vm1244_vm0 = vcmp.eq.f32.partialorder %v1243_v26, 8.507059e+37  ;;  %v11_v4 = vstv %s2557_s5 }
 0x4dc   :  { %v1261_v22 = vor.u32 1.1754944e-38, %v1260_v53  ;;  %vm1259_vm1 = vcmp.eq.f32.partialorder %v1258_v21, 8.507059e+37  ;;  %12 = vst [vmem:[#allocation2] sm:$0x1] %v11_v4 }
 0x4dd   :  { %v1747_v13 = vpop.eup %1746 }
 0x4de   :  { %v1233_v14 = vadd.f32 1.0, %v1747_v13 }
 0x4df   :  { %v1749_v19 = vpop.eup %1748 }
 0x4e0   :  { %v1751_v33 = vpop.eup %1750  ;;  %v1235_v34 = vmul.f32 %v1749_v19, %v1231_v0  ;;  %1752 = vrcp.f32 %v1233_v14  ;;  %vm1240_vm10 = vweird.f32 %v1749_v19  ;;  %v1275_v28 = vand.u32 2147483648, %v1233_v14 }
 0x4e1   :  { %v1250_v35 = vmul.f32 %v1751_v33, %v1232_v1  ;;  %1754 = vtanh.f32 %v1221_v32  ;;  %vm1255_vm11 = vweird.f32 %v1751_v33  ;;  %vm1241_vm14 = vmor %vm1239_vm12, %vm1240_vm10  ;;  %vm1269_vm3 = vweird.f32 %v1233_v14 }
 0x4e2   :  { %v1236_v45 = vsub.f32 1.0, %v1235_v34  ;;  %vm1256_vm15 = vmor %vm1254_vm13, %vm1255_vm11  ;;  %v1273_v41 = vand.u32 2147483647, %v1233_v14  ;;  %v1276_v57 = vor.u32 1.1754944e-38, %v1275_v28 }
 0x4e3   :  { %v1251_v49 = vsub.f32 1.0, %v1250_v35 }
 0x4e4   :  { %v1237_v59 = vmul.f32 %v1749_v19, %v1236_v45  ;;  %vm1274_vm5 = vcmp.eq.f32.partialorder %v1273_v41, 8.507059e+37 }
 0x4e5   :  { %v1252_v38 = vmul.f32 %v1751_v33, %v1251_v49 }
 0x4e6   :  { %v1753_v36 = vpop.eup %1752  ;;  %v1238_v48 = vadd.f32 %v1749_v19, %v1237_v59 }
 0x4e7   :  { %v1265_v8 = vmul.f32 %v1753_v36, %v1233_v14  ;;  %v1253_v11 = vadd.f32 %v1751_v33, %v1252_v38  ;;  %v1755_v10 = vpop.eup %1754  ;;  %vm1270_vm2 = vweird.f32 %v1753_v36 }
 0x4e8   :  { %v1242_v61 = vsel %vm1241_vm14, %v1749_v19, %v1238_v48  ;;  %vm1271_vm4 = vmor %vm1269_vm3, %vm1270_vm2  ;;  %v2602_v19 = vld [vmem:[#allocation24_spill] sm:$0xff]  ;;  %vm1417_vm2 = vcmask 7168  }
 0x4e9   :  { %v1266_v25 = vsub.f32 1.0, %v1265_v8  ;;  %v1247_v31 = vsel %vm1244_vm0, %v1246_v63, %v1242_v61  ;;  %v1257_v3 = vsel %vm1256_vm15, %v1751_v33, %v1253_v11 }
 0x4ea   :  { %v1262_v15 = vsel %vm1259_vm1, %v1261_v22, %v1257_v3  ;;  %v1281_v60 = vmul.f32 %v1755_v10, %v1247_v31 }
 0x4eb   :  { %v1280_v9 = vmul.f32 %v1262_v15, %v2527_v6  ;;  %v1267_v54 = vmul.f32 %v1753_v36, %v1266_v25 }
 0x4ed   :  { %v2535_v37 = vadd.f32 %v1281_v60, %v1280_v9  ;;  %v1268_v2 = vadd.f32 %v1753_v36, %v1267_v54 }
 0x4ef   :  { %1756 = vtanh.f32 %v2535_v37  ;;  %v1272_v58 = vsel %vm1271_vm4, %v1753_v36, %v1268_v2 }
 0x4f0   :  { %v1277_v42 = vsel %vm1274_vm5, %v1276_v57, %v1272_v58 }
 0x4f5   :  { %v1757_v27 = vpop.eup %1756 }
 0x4f6   :  { %v1284_v7 = vmul.f32 %v1757_v27, %v1277_v42  ;;  %v1644_v27 = vld [vmem:[%s2556_s4] ss:$0 sm:$0xff] }
 0x4f8   :  { %v1285_v47 = vpack.c.bf16 %v1284_v7, %v1284_v7 }
 0x4fa   :  { %1294 = vmatmul.bf16.vlgmr.msra.gmra.mxu0 %v1285_v47  ;;  %1307 = vmatmul.bf16.vlgmr.msra.gmra.mxu1 %v1285_v47 }
 0x4fb   :  { %1320 = vmatmul.bf16.vlgmr.msra.gmra.mxu2 %v1285_v47  ;;  %1333 = vmatmul.bf16.vlgmr.msra.gmra.mxu3 %v1285_v47 }
 0x577   :  { %v1295_v6 = vpop.f32.mrf.mxu0  ;;  %v1308_v62 = vpop.f32.mrf.mxu1 }
 0x578   :  { %v1338_v18 = vadd.f32 %v1295_v6, %v2599_v46  ;;  %v1339_v16 = vadd.f32 %v1308_v62, %v2600_v12 }
 0x57a   :  { %v1608_v17 = vmul.f32 -1.442695, %v1338_v18  ;;  %v1609_v23 = vmul.f32 -1.442695, %v1339_v16 }
 0x57c   :  { %1758 = vpow2.f32 %v1608_v17 }
 0x57d   :  { %1760 = vpow2.f32 %v1609_v23 }
 0x57e   :  { %v1321_v24 = vpop.f32.mrf.mxu2  ;;  %v1334_v29 = vpop.f32.mrf.mxu3 }
 0x57f   :  { %v1340_v39 = vadd.f32 %v1321_v24, %v2601_v30  ;;  %v1297_v40 = vpop.f32.mrf.mxu0  ;;  %v1310_v43 = vpop.f32.mrf.mxu1  ;;  %v1341_v20 = vadd.f32 %v1334_v29, %v2602_v19 }
 0x581   :  { %v1610_v44 = vmul.f32 -1.442695, %v1340_v39 }
 0x582   :  { %v1759_v51 = vpop.eup %1758 }
 0x583   :  { %v1761_v52 = vpop.eup %1760  ;;  %v1351_v55 = vadd.f32 1.0, %v1759_v51  ;;  %1762 = vpow2.f32 %v1610_v44 }
 0x584   :  { %v1352_v56 = vadd.f32 1.0, %v1761_v52 }
 0x585   :  { %1764 = vrcp.f32 %v1351_v55  ;;  %v1365_v49 = vand.u32 2147483648, %v1351_v55  ;;  %v1363_v59 = vand.u32 2147483647, %v1351_v55  ;;  %vm1359_vm8 = vweird.f32 %v1351_v55 }
 0x586   :  { %1766 = vrcp.f32 %v1352_v56  ;;  %v1323_v0 = vpop.f32.mrf.mxu2  ;;  %v1336_v1 = vpop.f32.mrf.mxu3  ;;  %v1380_v50 = vand.u32 2147483648, %v1352_v56  ;;  %v1378_v38 = vand.u32 2147483647, %v1352_v56  ;;  %vm1374_vm9 = vweird.f32 %v1352_v56 }
 0x587   :  { %v1366_v48 = vor.u32 1.1754944e-38, %v1365_v49  ;;  %vm1364_vm12 = vcmp.eq.f32.partialorder %v1363_v59, 8.507059e+37 }
 0x588   :  { %v1381_v11 = vor.u32 1.1754944e-38, %v1380_v50  ;;  %vm1379_vm13 = vcmp.eq.f32.partialorder %v1378_v38, 8.507059e+37 }
 0x589   :  { %v1763_v5 = vpop.eup %1762 }
 0x58a   :  { %v1353_v13 = vadd.f32 1.0, %v1763_v5 }
 0x58b   :  { %v1765_v14 = vpop.eup %1764 }
 0x58c   :  { %v1767_v32 = vpop.eup %1766  ;;  %v1355_v33 = vmul.f32 %v1765_v14, %v1351_v55  ;;  %1768 = vrcp.f32 %v1353_v13  ;;  %vm1360_vm6 = vweird.f32 %v1765_v14  ;;  %v1395_v28 = vand.u32 2147483648, %v1353_v13 }
 0x58d   :  { %v1370_v34 = vmul.f32 %v1767_v32, %v1352_v56  ;;  %1770 = vtanh.f32 %v1341_v20  ;;  %vm1375_vm7 = vweird.f32 %v1767_v32  ;;  %vm1361_vm10 = vmor %vm1359_vm8, %vm1360_vm6  ;;  %vm1389_vm15 = vweird.f32 %v1353_v13 }
 0x58e   :  { %v1356_v35 = vsub.f32 1.0, %v1355_v33  ;;  %vm1376_vm11 = vmor %vm1374_vm9, %vm1375_vm7  ;;  %v1393_v41 = vand.u32 2147483647, %v1353_v13  ;;  %v1396_v57 = vor.u32 1.1754944e-38, %v1395_v28 }
 0x58f   :  { %v1371_v45 = vsub.f32 1.0, %v1370_v34 }
 0x590   :  { %v1357_v53 = vmul.f32 %v1765_v14, %v1356_v35  ;;  %vm1394_vm1 = vcmp.eq.f32.partialorder %v1393_v41, 8.507059e+37 }
 0x591   :  { %v1372_v26 = vmul.f32 %v1767_v32, %v1371_v45 }
 0x592   :  { %v1769_v21 = vpop.eup %1768  ;;  %v1358_v36 = vadd.f32 %v1765_v14, %v1357_v53 }
 0x593   :  { %v1373_v8 = vadd.f32 %v1767_v32, %v1372_v26  ;;  %v1385_v63 = vmul.f32 %v1769_v21, %v1353_v13  ;;  %v1771_v61 = vpop.eup %1770  ;;  %vm1390_vm14 = vweird.f32 %v1769_v21 }
 0x594   :  { %v1362_v22 = vsel %vm1361_vm10, %v1765_v14, %v1358_v36  ;;  %vm1391_vm0 = vmor %vm1389_vm15, %vm1390_vm14 }
 0x595   :  { %v1367_v10 = vsel %vm1364_vm12, %v1366_v48, %v1362_v22  ;;  %v1377_v25 = vsel %vm1376_vm11, %v1767_v32, %v1373_v8  ;;  %v1386_v31 = vsub.f32 1.0, %v1385_v63 }
 0x596   :  { %v1401_v3 = vmul.f32 %v1771_v61, %v1367_v10  ;;  %v1382_v15 = vsel %vm1379_vm13, %v1381_v11, %v1377_v25 }
 0x597   :  { %v1387_v60 = vmul.f32 %v1769_v21, %v1386_v31  ;;  %v1400_v9 = vmul.f32 %v1382_v15, %v2535_v37  ;;  %v1645_v37 = vld [vmem:[#allocation2] ss:$0 sm:$0xff] }
 0x599   :  { %v1402_v54 = vadd.f32 %v1401_v3, %v1400_v9  ;;  %v1388_v2 = vadd.f32 %v1769_v21, %v1387_v60 }
 0x59b   :  { %1772 = vtanh.f32 %v1402_v54  ;;  %v1392_v58 = vsel %vm1391_vm0, %v1769_v21, %v1388_v2 }
 0x59c   :  { %v1397_v7 = vsel %vm1394_vm1, %v1396_v57, %v1392_v58 }
 0x5a1   :  { %v1773_v42 = vpop.eup %1772 }
 0x5a2   :  { %v1404_v47 = vmul.f32 %v1773_v42, %v1397_v7 }
 0x5a4   :  { %v1409_v6 = vmul.f32 %v1644_v27, %v1404_v47 }
 0x5a6   :  { %1410 = vadd.xlane.f32.xlu0 %v1409_v6 }
 0x619   :  { %v1411_v62 = vpop.xlane.xlu0 %1410 }
 0x61a   :  { %v1416_v46 = vadd.f32 %v1645_v37, %v1411_v62 }
 0x61c   :  { %1418 = vst.msk [vmem:[%s2558_s6] sm:$0xff] %vm1417_vm2, %v1416_v46 }

</bundles_post_ra>
